<compile_context>
chip_gen: v7x
topology: tpu7x:2x2x1
jax: 0.10.0
libtpu: 0.0.40
codegen_flags: <defaults>
</compile_context>

<pallas_src>
import functools

import jax
import jax.numpy as jnp
from jax.experimental import pallas as pl
from jax.experimental.pallas import tpu as pltpu

MAT_DIFF_LOSS_SCALE = 0.001


def _detect_num_cores():
    """2 TensorCores on v7x, 1 on v5e/v6e. Wrong guesses are still correct."""
    try:
        kind = jax.devices()[0].device_kind.lower()
    except Exception:
        return 1
    if ("v7" in kind) or ("tpu7" in kind) or ("7x" in kind):
        return 2
    return 1


def _get_loss_kernel(pred_ref, target_ref, trans_ref, out_ref, *,
                     batch, block_b, steps_per_core, scale):
    c = pl.program_id(0)   # core axis ("parallel")
    j = pl.program_id(1)   # batch-block axis ("arbitrary", reduction)

    @pl.when(j == 0)
    def _init():
        out_ref[...] = jnp.zeros_like(out_ref)

    pred = pred_ref[...].astype(jnp.float32)        # (TB, C) f32 log-probs
    target = target_ref[...]                         # (TB, 1) i32
    trans = trans_ref[...]                           # (TB, K, K) native dtype

    tb, nclass = pred.shape
    k = trans.shape[1]

    # Row-validity mask for partial / padded blocks (logical row index).
    blk = c * steps_per_core + j
    row = blk * block_b + jax.lax.broadcasted_iota(jnp.int32, (tb, 1), 0)
    valid = row < batch                               # (TB, 1) bool

    # ---- NLL contribution: sum over valid rows of -pred[r, target[r]] ----
    cls_ids = jax.lax.broadcasted_iota(jnp.int32, (tb, nclass), 1)          # (TB, C)
    onehot = cls_ids == target                                              # (TB, C)
    picked = jnp.sum(jnp.where(onehot, pred, 0.0), axis=1, keepdims=True)   # (TB, 1)
    picked = jnp.where(valid, picked, 0.0)
    nll_sum = jnp.sum(picked, axis=0, keepdims=True)                        # (1, 1)

    # ---- feature-transform regularizer contribution ----
    # gram[b] = trans[b] @ trans[b]^T  (batched MXU matmul, f32 accumulate)
    gram = jax.lax.dot_general(
        trans, trans,
        dimension_numbers=(((2,), (2,)), ((0,), (0,))),
        preferred_element_type=jnp.float32,
    )                                                                        # (TB, K, K)
    # ||G - I||_F^2 = sum(G*G) - 2*tr(G) + K,  tr(G) = ||T||_F^2
    sum_g2 = jnp.sum(jnp.sum(gram * gram, axis=2), axis=1, keepdims=True)    # (TB, 1)
    t32 = trans.astype(jnp.float32)
    tr_g = jnp.sum(jnp.sum(t32 * t32, axis=2), axis=1, keepdims=True)        # (TB, 1)
    frosq = jnp.maximum(sum_g2 - 2.0 * tr_g + jnp.float32(k), 0.0)
    fro = jnp.where(valid, jnp.sqrt(frosq), 0.0)                             # (TB, 1)
    fro_sum = jnp.sum(fro, axis=0, keepdims=True)                            # (1, 1)

    # Per-core partial sum of (scale*fro - logp); normalization (/B) in wrapper.
    partial = jnp.float32(scale) * fro_sum - nll_sum                         # (1, 1)
    out_ref[...] += jnp.broadcast_to(partial.reshape(1, 1, 1), out_ref.shape)


def get_loss(pred, target, trans_feat, *,
             mat_diff_loss_scale=MAT_DIFF_LOSS_SCALE,
             block_b=None,
             vmem_budget_bytes=20 * 1024 * 1024,
             num_cores=None):
    """pred: (B, C) log-probs, target: (B,) int, trans_feat: (B, K, K)."""
    B, C = pred.shape
    K = trans_feat.shape[1]

    trans_isz = jnp.dtype(trans_feat.dtype).itemsize
    pred_isz = jnp.dtype(pred.dtype).itemsize

    # ---- batch tile from a VMEM budget (double-buffered inputs + f32 temps) ----
    if block_b is None:
        row_bytes = (K * K * (2 * trans_isz + 3 * 4)       # 2x trans tile + ~3 f32 slabs
                     + C * (2 * pred_isz + 4) + 2 * 4)
        tb = max(8, vmem_budget_bytes // row_bytes)
    else:
        tb = block_b
    tb = min(tb, 512)
    if tb >= B:
        TB = B
    else:
        TB = max(8, (tb // 8) * 8)                          # sublane-aligned tile
    nblk = pl.cdiv(B, TB)

    # ---- core-parallel leading axis (v7x: 2 TCs, else 1) ----
    if num_cores is None:
        num_cores = _detect_num_cores()
    num_cores = max(1, min(num_cores, nblk))
    spc = pl.cdiv(nblk, num_cores)                          # steps per core

    target_2d = target.astype(jnp.int32).reshape(B, 1)

    def in_idx2(c, j):
        return (jnp.minimum(c * spc + j, nblk - 1), 0)      # clamp padded steps

    def in_idx3(c, j):
        return (jnp.minimum(c * spc + j, nblk - 1), 0, 0)

    kernel = functools.partial(
        _get_loss_kernel, batch=B, block_b=TB, steps_per_core=spc,
        scale=float(mat_diff_loss_scale))

    cost = pl.CostEstimate(
        flops=2 * B * K * K * K + 6 * B * K * K + 4 * B * C,
        transcendentals=B,
        bytes_accessed=B * K * K * trans_isz + B * C * pred_isz + B * 4
                       + num_cores * 8 * 128 * 4,
    )

    out = pl.pallas_call(
        kernel,
        out_shape=jax.ShapeDtypeStruct((num_cores, 8, 128), jnp.float32),
        grid_spec=pltpu.PrefetchScalarGridSpec(
            num_scalar_prefetch=0,
            grid=(num_cores, spc),
            in_specs=[
                pl.BlockSpec((TB, C), in_idx2),
                pl.BlockSpec((TB, 1), in_idx2),
                pl.BlockSpec((TB, K, K), in_idx3),
            ],
            out_specs=pl.BlockSpec((1, 8, 128), lambda c, j: (c, 0, 0)),
        ),
        compiler_params=pltpu.CompilerParams(
            dimension_semantics=("parallel", "arbitrary"),
            vmem_limit_bytes=32 * 1024 * 1024,
        ),
        cost_estimate=cost,
    )(pred, target_2d, trans_feat)

    # Per-core partials live at [c, 0, 0]; sum and normalize by batch.
    return jnp.sum(out[:, 0, 0]) / jnp.float32(B)


def _reference_loss(pred, target, trans_feat, scale=MAT_DIFF_LOSS_SCALE):
    # Pure-JAX reference (mirrors F.nll_loss + feature_transform_reguliarzer).
    B = pred.shape[0]
    nll = -jnp.mean(pred.astype(jnp.float32)[jnp.arange(B), target])
    K = trans_feat.shape[1]
    eye = jnp.eye(K, dtype=jnp.float32)
    tf32 = trans_feat.astype(jnp.float32)
    gram = jnp.einsum('bij,bkj->bik', tf32, tf32)
    fro = jnp.sqrt(jnp.sum((gram - eye[None]) ** 2, axis=(1, 2)))
    return nll + jnp.mean(fro) * scale


if __name__ == "__main__":
    key = jax.random.PRNGKey(0)
    k1, k2, k3 = jax.random.split(key, 3)

    B, C, K = 10, 16, 64   # batch, num classes, feature-transform dim (PointNet: K=64)

    logits = jax.random.normal(k1, (B, C), dtype=jnp.float32)
    pred = jax.nn.log_softmax(logits, axis=-1)                  # log-probs like PointNet head
    target = jax.random.randint(k2, (B,), 0, C, dtype=jnp.int32)
    trans_feat = jax.random.normal(k3, (B, K, K), dtype=jnp.float32) * 0.1

    ref = _reference_loss(pred, target, trans_feat)

    # 1) small forced tile -> multi-step pipeline with a partial (masked) last block
    loss_tiled = get_loss(pred, target, trans_feat, block_b=8)
    jax.block_until_ready(loss_tiled)
    assert jnp.allclose(loss_tiled, ref, rtol=1e-5, atol=1e-5), (loss_tiled, ref)

    # 2) auto (VMEM-budgeted) tile -> full batch in one block
    loss_auto = get_loss(pred, target, trans_feat)
    jax.block_until_ready(loss_auto)
    assert jnp.allclose(loss_auto, ref, rtol=1e-5, atol=1e-5), (loss_auto, ref)

    # 3) bf16 trans_feat pass-through (halves HBM traffic on the dominant stream)
    loss_bf16 = get_loss(pred, target, trans_feat.astype(jnp.bfloat16), block_b=8)
    jax.block_until_ready(loss_bf16)
    assert jnp.allclose(loss_bf16, ref, rtol=1e-2, atol=1e-2), (loss_bf16, ref)

    print("KERNEL_OK")
</pallas_src>

<mosaic_0001>
module attributes {stable_mosaic.version = 11 : i64} {
  func.func @_get_loss_kernel(%arg0: i32, %arg1: i32, %arg2: memref<8x16xf32, #tpu.memory_space<vmem>>, %arg3: memref<8x1xi32, #tpu.memory_space<vmem>>, %arg4: memref<8x64x64xf32, #tpu.memory_space<vmem>>, %arg5: memref<1x8x128xf32, #tpu.memory_space<vmem>>) attributes {dimension_semantics = [#tpu.dimension_semantics<parallel>, #tpu.dimension_semantics<arbitrary>], iteration_bounds = array<i64: 1, 2>, scalar_prefetch = 0 : i64, scratch_operands = 0 : i64, tpu.core_type = #tpu.core_type<tc>, window_params = [{transform_indices = @transform_0, window_bounds = array<i64: 8, 16>}, {transform_indices = @transform_1, window_bounds = array<i64: 8, 1>}, {transform_indices = @transform_2, window_bounds = array<i64: 8, 64, 64>}, {transform_indices = @transform_3, window_bounds = array<i64: 1, 8, 128>}]} {
    %c0_i32 = arith.constant 0 : i32
    %0 = arith.cmpi eq, %arg1, %c0_i32 : i32
    %1 = arith.extui %0 : i1 to i32
    %c0_i32_0 = arith.constant 0 : i32
    %2 = arith.cmpi ne, %1, %c0_i32_0 : i32
    scf.if %2 {
      %cst_27 = arith.constant 0.000000e+00 : f32
      %55 = vector.broadcast %cst_27 : f32 to vector<1x8x128xf32>
      %c0_28 = arith.constant 0 : index
      %c0_29 = arith.constant 0 : index
      %c0_30 = arith.constant 0 : index
      %56 = vector.load %arg5[%c0_28, %c0_29, %c0_30] : memref<1x8x128xf32, #tpu.memory_space<vmem>>, vector<1x8x128xf32>
      tpu.vector_store %arg5[%c0_28, %c0_29, %c0_30], %55 {strides = array<i32>} : memref<1x8x128xf32, #tpu.memory_space<vmem>>, vector<1x8x128xf32>,
    } else {
    }
    %c0 = arith.constant 0 : index
    %c0_1 = arith.constant 0 : index
    %3 = vector.load %arg2[%c0, %c0_1] : memref<8x16xf32, #tpu.memory_space<vmem>>, vector<8x16xf32>
    %c0_2 = arith.constant 0 : index
    %c0_3 = arith.constant 0 : index
    %4 = vector.load %arg3[%c0_2, %c0_3] : memref<8x1xi32, #tpu.memory_space<vmem>>, vector<8x1xi32>
    %c0_4 = arith.constant 0 : index
    %c0_5 = arith.constant 0 : index
    %c0_6 = arith.constant 0 : index
    %5 = vector.load %arg4[%c0_4, %c0_5, %c0_6] : memref<8x64x64xf32, #tpu.memory_space<vmem>>, vector<8x64x64xf32>
    %c2_i32 = arith.constant 2 : i32
    %6 = arith.muli %arg0, %c2_i32 : i32
    %7 = arith.addi %6, %arg1 : i32
    %c8_i32 = arith.constant 8 : i32
    %8 = arith.muli %7, %c8_i32 : i32
    %9 = tpu.iota {dimensions = array<i32: 0>} : vector<8x1xi32>
    %10 = vector.broadcast %8 : i32 to vector<8x1xi32>
    %11 = arith.addi %10, %9 : vector<8x1xi32>
    %c10_i32 = arith.constant 10 : i32
    %12 = vector.broadcast %c10_i32 : i32 to vector<8x1xi32>
    %13 = arith.cmpi slt, %11, %12 : vector<8x1xi32>
    %14 = tpu.iota {dimensions = array<i32: 1>} : vector<8x16xi32>
    %15 = vector.broadcast %4 : vector<8x1xi32> to vector<8x16xi32>
    %16 = arith.cmpi eq, %14, %15 : vector<8x16xi32>
    %cst = arith.constant 0.000000e+00 : f32
    %17 = vector.broadcast %cst : f32 to vector<8x16xf32>
    %18 = arith.select %16, %3, %17 : vector<8x16xi1>, vector<8x16xf32>
    %cst_7 = arith.constant dense<0.000000e+00> : vector<8xf32>
    %19 = vector.multi_reduction <add>, %18, %cst_7 [1] : vector<8x16xf32> to vector<8xf32>
    %20 = vector.shape_cast %19 : vector<8xf32> to vector<8x1xf32>
    %cst_8 = arith.constant 0.000000e+00 : f32
    %21 = vector.broadcast %cst_8 : f32 to vector<8x1xf32>
    %22 = arith.select %13, %20, %21 : vector<8x1xi1>, vector<8x1xf32>
    %cst_9 = arith.constant dense<0.000000e+00> : vector<1xf32>
    %23 = vector.multi_reduction <add>, %22, %cst_9 [0] : vector<8x1xf32> to vector<1xf32>
    %24 = vector.shape_cast %23 : vector<1xf32> to vector<1x1xf32>
    %cst_10 = arith.constant dense<0.000000e+00> : vector<8x64x64xf32>
    %25 = tpu.matmul %5, %5, %cst_10 {dimension_numbers = #tpu.dot_dimension_numbers<[2], [2], [1], [1], [0, 0, 0, 1, 1, 1], [0], [0]>} : vector<8x64x64xf32>, vector<8x64x64xf32>, vector<8x64x64xf32> -> vector<8x64x64xf32>
    %26 = arith.mulf %25, %25 : vector<8x64x64xf32>
    %cst_11 = arith.constant dense<0.000000e+00> : vector<8x64xf32>
    %27 = vector.multi_reduction <add>, %26, %cst_11 [2] : vector<8x64x64xf32> to vector<8x64xf32>
    %cst_12 = arith.constant dense<0.000000e+00> : vector<8xf32>
    %28 = vector.multi_reduction <add>, %27, %cst_12 [1] : vector<8x64xf32> to vector<8xf32>
    %29 = vector.shape_cast %28 : vector<8xf32> to vector<8x1xf32>
    %30 = arith.mulf %5, %5 : vector<8x64x64xf32>
    %cst_13 = arith.constant dense<0.000000e+00> : vector<8x64xf32>
    %31 = vector.multi_reduction <add>, %30, %cst_13 [2] : vector<8x64x64xf32> to vector<8x64xf32>
    %cst_14 = arith.constant dense<0.000000e+00> : vector<8xf32>
    %32 = vector.multi_reduction <add>, %31, %cst_14 [1] : vector<8x64xf32> to vector<8xf32>
    %33 = vector.shape_cast %32 : vector<8xf32> to vector<8x1xf32>
    %cst_15 = arith.constant 2.000000e+00 : f32
    %34 = vector.broadcast %cst_15 : f32 to vector<8x1xf32>
    %35 = arith.mulf %34, %33 : vector<8x1xf32>
    %36 = arith.subf %29, %35 : vector<8x1xf32>
    %cst_16 = arith.constant 6.400000e+01 : f32
    %37 = vector.broadcast %cst_16 : f32 to vector<8x1xf32>
    %38 = arith.addf %36, %37 : vector<8x1xf32>
    %cst_17 = arith.constant 0.000000e+00 : f32
    %39 = vector.broadcast %cst_17 : f32 to vector<8x1xf32>
    %40 = arith.maximumf %38, %39 : vector<8x1xf32>
    %41 = math.sqrt %40 : vector<8x1xf32>
    %cst_18 = arith.constant 0.000000e+00 : f32
    %42 = vector.broadcast %cst_18 : f32 to vector<8x1xf32>
    %43 = arith.select %13, %41, %42 : vector<8x1xi1>, vector<8x1xf32>
    %cst_19 = arith.constant dense<0.000000e+00> : vector<1xf32>
    %44 = vector.multi_reduction <add>, %43, %cst_19 [0] : vector<8x1xf32> to vector<1xf32>
    %45 = vector.shape_cast %44 : vector<1xf32> to vector<1x1xf32>
    %cst_20 = arith.constant 1.000000e-03 : f32
    %46 = vector.broadcast %cst_20 : f32 to vector<1x1xf32>
    %47 = arith.mulf %46, %45 : vector<1x1xf32>
    %48 = arith.subf %47, %24 : vector<1x1xf32>
    %c0_21 = arith.constant 0 : index
    %c0_22 = arith.constant 0 : index
    %c0_23 = arith.constant 0 : index
    %49 = vector.load %arg5[%c0_21, %c0_22, %c0_23] : memref<1x8x128xf32, #tpu.memory_space<vmem>>, vector<1x8x128xf32>
    %50 = vector.shape_cast %48 : vector<1x1xf32> to vector<1x1x1xf32>
    %51 = vector.shape_cast %50 : vector<1x1x1xf32> to vector<1x1x1xf32>
    %52 = vector.broadcast %51 : vector<1x1x1xf32> to vector<1x8x128xf32>
    %53 = arith.addf %49, %52 : vector<1x8x128xf32>
    %c0_24 = arith.constant 0 : index
    %c0_25 = arith.constant 0 : index
    %c0_26 = arith.constant 0 : index
    %54 = vector.load %arg5[%c0_24, %c0_25, %c0_26] : memref<1x8x128xf32, #tpu.memory_space<vmem>>, vector<1x8x128xf32>
    tpu.vector_store %arg5[%c0_24, %c0_25, %c0_26], %53 {strides = array<i32>} : memref<1x8x128xf32, #tpu.memory_space<vmem>>, vector<1x8x128xf32>,
    return
  }
  func.func @transform_0(%arg0: i32, %arg1: i32) -> (i32, i32) {
    %c2_i32 = arith.constant 2 : i32
    %0 = arith.muli %arg0, %c2_i32 : i32
    %1 = arith.addi %0, %arg1 : i32
    %c1_i32 = arith.constant 1 : i32
    %2 = arith.minsi %1, %c1_i32 : i32
    %c0_i32 = arith.constant 0 : i32
    %c0_i32_0 = arith.constant 0 : i32
    return %2, %c0_i32 : i32, i32
  }
  func.func @transform_1(%arg0: i32, %arg1: i32) -> (i32, i32) {
    %c2_i32 = arith.constant 2 : i32
    %0 = arith.muli %arg0, %c2_i32 : i32
    %1 = arith.addi %0, %arg1 : i32
    %c1_i32 = arith.constant 1 : i32
    %2 = arith.minsi %1, %c1_i32 : i32
    %c0_i32 = arith.constant 0 : i32
    %c0_i32_0 = arith.constant 0 : i32
    return %2, %c0_i32 : i32, i32
  }
  func.func @transform_2(%arg0: i32, %arg1: i32) -> (i32, i32, i32) {
    %c2_i32 = arith.constant 2 : i32
    %0 = arith.muli %arg0, %c2_i32 : i32
    %1 = arith.addi %0, %arg1 : i32
    %c1_i32 = arith.constant 1 : i32
    %2 = arith.minsi %1, %c1_i32 : i32
    %c0_i32 = arith.constant 0 : i32
    %c0_i32_0 = arith.constant 0 : i32
    %c0_i32_1 = arith.constant 0 : i32
    return %2, %c0_i32, %c0_i32_0 : i32, i32, i32
  }
  func.func @transform_3(%arg0: i32, %arg1: i32) -> (i32, i32, i32) {
    %c0_i32 = arith.constant 0 : i32
    %c0_i32_0 = arith.constant 0 : i32
    %c0_i32_1 = arith.constant 0 : i32
    return %arg0, %c0_i32, %c0_i32_0 : i32, i32, i32
  }
}

</mosaic_0001>

<bundles_post_ra>
// kernel: tpu_custom_call.1
= control target key start
LH: loop header
LB: loop body
LE: loop exit
PB: predicated region body
PF: predicated region fallthrough
CT: control target
= control target key end

     0   :  { %8 = vsyncpa [#allocation3], 0  ;;  %s5161_s0 = inlined_call_operand.vmem [shape: f32[10,16], index: 0, kind: input, shape index: {}]   ;;  %s5162_s1 = inlined_call_operand.vmem [shape: s32[10,1], index: 1, kind: input, shape index: {}]   ;;  %s5163_s2 = inlined_call_operand.hbm [shape: f32[10,64,64], index: 2, kind: input, shape index: {}]   ;;  %s5164_s3 = inlined_call_operand.hbm [shape: f32[1,8,128], index: 3, kind: output, shape index: {}]  }
   0x1   :  { %10 = vsyncpa [#allocation3 + $0x1], 0 }
   0x2   :  { %11 = vsyncpa [#allocation4], 0  ;;  %s3774_s12 = smov 0   ;;  %s3776_s13 = smov 0  }
   0x3   :  { %s3778_s14 = smov 0   ;;  %s3780_s15 = smov 0  }
   0x4   :  { %s3782_s16 = smov 0   ;;  %s3784_s17 = smov 0  }
   0x5 LB: > { %s26_s18 = sadd.s32 1, %s3742_s16  ;;  %p103_p1 = scmp.lt.s32.totalorder %s3742_s16, 1  ;;  %s3746_s17 = sphi %s3784_s17, %s17_s17   ;;  %s3742_s16 = sphi %s3782_s16, %s5173_s16   ;;  %s3738_s15 = sphi %s3780_s15, %s5172_s15   ;;  %s3734_s14 = sphi %s3778_s14, %s5171_s14   ;;  %s3730_s13 = sphi %s3776_s13, %s5170_s13   ;;  %s3726_s12 = sphi %s3774_s12, %s5169_s12  }
   0x6   : > { %p27_p0 = scmp.ge.s32.totalorder %s26_s18, 2  ;;  %s2869_s19 = sadd.s32 4294967295, %s3746_s17  }
   0x7   : > { %p119_p2 = scmp.ne.s32.totalorder %s3734_s14, %s3730_s13  ;;  %p120_p4 = scmp.eq.s32.totalorder %s3746_s17, 0 }
   0x8   : > { %s5175_s18 = smov (%p27_p0, %s26_s18), 0  ;;  %p125_p5 = scmp.ne.s32.totalorder %s3730_s13, %s3726_s12 }
   0x9   : > { %s3810_s20 = scalar_select %p103_p1, %s3742_s16, 1 }
   0xa   : > { %p107_p3 = scmp.lt.s32.totalorder %s5175_s18, 1  ;;  %p126_p6 = scmp.eq.s32.totalorder %s2869_s19, 0 }
   0xb   : > { %p121_p7 = por %p120_p4, %p119_p2  ;;  %s112_s24 = sadd.s32 1, %s3734_s14 }
   0xc   : > { %s108_s21 = scalar_select %p107_p3, %s5175_s18, 1 }
   0xd   : > { %p3818_p8 = por %p126_p6, %p125_p5  ;;  %p2871_p10 = scmp.ge.s32.totalorder %s3746_s17, 2 }
   0xe   : > { %s109_s23 = ssub.s32 %s3810_s20, %s108_s21 }
   0xf   : > { %p110_p9 = scmp.eq.s32.totalorder %s109_s23, 0  ;;  %171 = sbr.rel (%p2871_p10) target bundleno = 57 (0x39), region = 16 }
  0x11   : > { %s3825_s25 = scalar_select %p110_p9, %s3734_s14, %s112_s24  }
  0x16   : > { %204 = sbr.rel (!%p121_p7) target bundleno = 57 (0x39), region = 28  ;;  %s205_s26 = sand.u32 (%p121_p7), 1, %s3734_s14  }
  0x17   : > { %s2873_s27 = sshll.u32 (%p121_p7), %s3810_s20, 3  ;;  %s2872_s28 = sshll.u32 (%p121_p7), %s205_s26, 9 }
  0x18   : > { %s215_s29 = ssub.s32 (%p121_p7), 10, %s2873_s27  ;;  %s3833_s5 = scalar_lea.sflag (%p121_p7), [#allocation3], %s205_s26 }
  0x19   : > { %p216_p11 = scmp.lt.s32.totalorder (%p121_p7), %s215_s29, 8  ;;  %s209_s6 = scalar_lea.vmem (%p121_p7), [#allocation2], %s2872_s28 }
  0x1d   : > { %s5177_s29 = smov (!%p216_p11, %s215_s29), 8 }
  0x1e   : > { %s3830_s30 = sshll.u32 %s5177_s29, 10 }
  0x1f   : > { %s221_s4 = ssub.s32 8192, %s3830_s30 }
  0x20   : > { %222 = vsyncadd %s3833_s5, %s221_s4  ;;  %p2876_p12 = scmp.ne.s32.totalorder %s3830_s30, 0  ;;  %s3028_s7 = sshll.u32 %s3810_s20, 13 }
  0x21   : > { %s3841_s10 = scalar_lea.hbm %s5163_s2, %s3028_s7  ;;  %s229_s11 = sshll.u32 %s209_s6, 4  ;;  %s3843_s11 = int_to_ptr.vmem [resolvable:$true] %s229_s11 }
  0x22   : > { %s3638_s12 = scalar_lea.hbm %s3841_s10, %s3830_s30  ;;  %s3642_s20 = scalar_lea.hbm %s5163_s2, 10240 }
  0x23   : > { %p3639_p13 = scmp.ne.s32.totalorder %s3841_s10, %s3638_s12  ;;  %p3643_p2 = scmp.lt.u32.totalorder %s3841_s10, %s5163_s2 }
  0x24   : > { %p3644_p3 = scmp.lt.u32.totalorder %s3642_s20, %s3638_s12  ;;  %p3646_p5 = scmp.lt.u32.totalorder %s3638_s12, %s3841_s10 }
  0x25   : > { %p3640_p0 = pnand %p3639_p13, %p2876_p12 }
  0x26   : > { %p3645_p4 = por %p3644_p3, %p3643_p2 }
  0x27   : > { %p3641_p1 = pneg %p3640_p0 }
  0x28   : > { %p3647_p6 = por %p3646_p5, %p3645_p4 }
  0x2a   : > { %p3648_p7 = pnand %p3647_p6, %p3641_p1 }
  0x2c   : > { %3651 = shalt.err (!%p3648_p7)
}
  0x2d   : > { %s3652_s27 = scalar_lea.vmem %s3843_s11, %s3830_s30  ;;  %s3748_s28 = smov [#allocation2]  }
  0x2e   : > { %p3653_p9 = scmp.ne.s32.totalorder %s3843_s11, %s3652_s27  ;;  %s3656_s29 = sshll.u32 %s3748_s28, 4  ;;  %s3657_s29 = int_to_ptr.vmem [resolvable:$false] %s3656_s29 }
  0x2f   : > { %s3658_s4 = scalar_lea.vmem %s3657_s29, 16384  ;;  %p3659_p13 = scmp.lt.s32.totalorder %s3843_s11, %s3657_s29 }
  0x30   : > { %p3654_p10 = pnand %p3653_p9, %p2876_p12  ;;  %p3660_p0 = scmp.lt.s32.totalorder %s3658_s4, %s3652_s27 }
  0x32   : > { %p3655_p11 = pneg %p3654_p10  ;;  %p3661_p2 = por %p3660_p0, %p3659_p13 }
  0x34   : > { %p3662_p3 = pnand %p3661_p2, %p3655_p11 }
  0x36   : > { %3665 = shalt.err (!%p3662_p3)
}
  0x37   : > { %s3749_s6 = smov 128   ;;  %s3750_s7 = smov 8  }
  0x38   : > { %235 = dma.hbm_to_vmem [thread:$0]  (%p2876_p12), %s3841_s10, %s3830_s30, %s3843_s11, %s3833_s5, %s3749_s6, %s3749_s6, %s3750_s7  }
  0x39 PF: > { %p2882_p1 = scmp.ge.s32.totalorder %s3746_s17, 1  ;;  %p237_p4 = scmp.lt.s32.totalorder %s3746_s17, 3 }
  0x3b   : > { %p238_p5 = pnand %p2882_p1, %p237_p4 }
  0x3c   : > { %s243_s8 = sand.u32 (!%p238_p5), 1, %s3730_s13  }
  0x3d   : > { %241 = sbr.rel (%p238_p5) target bundleno = 815 (0x32f), region = 32  ;;  %s2883_s9 = sshll.u32 (!%p238_p5), %s243_s8, 9 }
  0x3e   : > { %s244_s12 = scalar_lea.sflag (!%p238_p5), [#allocation3], %s243_s8  ;;  %s3873_s21 = scalar_lea.vmem (!%p238_p5), [#allocation2], %s2883_s9 }
  0x44   : > { %3717 = dma.done.wait (%p3818_p8), %s244_s12, 8192  }
  0x45   : > { %3719 = vsyncadd (%p3818_p8), %s244_s12, 4294959104  ;;  %p283_p12 = scmp.lt.s32.totalorder %s3738_s15, 1  ;;  %p2892_p6 = scmp.ne.s32.totalorder %s3738_s15, 0 }
  0x46   : > { %v3751_v0 = vmov (!%p2892_p6), 0.0  }
  0x47   : > { %s284_s30 = scalar_select %p283_p12, %s3738_s15, 1 }
  0x48   : > { %318 = sbr.rel (%p2892_p6) target bundleno = 79 (0x4f), region = 40  ;;  %319 = vst [vmem:[#allocation5] sm:$0xff] (!%p2892_p6), %v3751_v0 }
  0x49   : > { %s5179_s30 = smov (!%p283_p12, %s284_s30), 1 }
  0x4a   : > { %s2887_s5 = sshll.u32 %s5179_s30, 3 }
  0x4b   : > { %s3884_s23 = scalar_lea.vmem %s5161_s0, %s2887_s5  ;;  %s300_s26 = scalar_lea.vmem %s5162_s1, %s2887_s5 }
  0x4f PF: > { %v321_v1 = vld [vmem:[%s300_s26] sm:$0xff]  ;;  %v3892_v3 = vld [vmem:[%s3873_s21 + $0x8] sm:$0xff]  ;;  %vm412_vm0 = vcmask 523264   ;;  %v3752_v4 = vmov 0   ;;  %v3908_v11 = vld [vmem:[%s3873_s21 + $0x10] sm:$0xff]  ;;  %vm401_vm2 = vcmask 130048  }
  0x50   : > { %v322_v2 = vld [vmem:[%s3873_s21] sm:$0xff]  ;;  %3635 = vset.pattern.permute.xlu0 %v3752_v4  ;;  %vm3897_vm1 = vmpackc.low %vm412_vm0, %vm412_vm0  ;;  %v3903_v8 = vld [vmem:[%s3873_s21 + $0x48] sm:$0xff]  ;;  %v2111_v24 = vmul.f32 %v3908_v11, %v3908_v11  ;;  %v2110_v47 = vmul.f32 %v3892_v3, %v3892_v3  ;;  %vm1774_vm4 = vcmask 130112   ;;  %vm1781_vm5 = vcmask 195712   ;;  %s2893_s22 = sshll.u32 %s3738_s15, 3  ;;  %s3753_s15 = smov [#allocation5]  }
  0x51   : > { %v3383_v5 = vpack.c.bf16 %v3892_v3, %v322_v2  ;;  %v330_v7 = vld [vmem:[%s3873_s21 + $0x40] sm:$0xff]  ;;  %3175 = vmatprep.mubr.msk.f32.mxu0 %vm412_vm0, %v322_v2  ;;  %v2109_v9 = vmul.f32 %v322_v2, %v322_v2  ;;  %397 = vperm.xlu0 %3635, %v321_v1   ;;  %v3911_v12 = vld [vmem:[%s3873_s21 + $0x18] sm:$0xff]  ;;  %v3914_v13 = vld [vmem:[%s3873_s21 + $0x50] sm:$0xff]  ;;  %v2118_v52 = vmul.f32 %v3903_v8, %v3903_v8  ;;  %vm1788_vm6 = vcmask 261312   ;;  %s2784_s27 = sshll.u32 %s3753_s15, 4  ;;  %p5117_p8 = scmp.eq.s32.totalorder %s2869_s19, 1  ;;  %s2785_s27 = int_to_ptr.vmem [resolvable:$true] %s2784_s27 }
  0x52   : > { %v3407_v10 = vpack.c.bf16 %v3903_v8, %v330_v7  ;;  %3203 = vmatprep.mubr.msk.f32.mxu1 %vm412_vm0, %v330_v7  ;;  %v3389_v14 = vpack.c.bf16 %v3911_v12, %v3908_v11  ;;  %v3922_v15 = vld [vmem:[%s3873_s21 + $0x58] sm:$0xff]  ;;  %v2117_v17 = vmul.f32 %v330_v7, %v330_v7  ;;  %v3938_v19 = vld [vmem:[%s3873_s21 + $0x20] sm:$0xff]  ;;  %v3941_v20 = vld [vmem:[%s3873_s21 + $0x28] sm:$0xff]  ;;  %v2179_v28 = vsel %vm412_vm0, %v2111_v24, 0.0  ;;  %s3666_s29 = scalar_lea.vmem %s2785_s27, 128  ;;  %p3673_p11 = scmp.lt.s32.totalorder %s2785_s27, %s2785_s27 }
  0x53   : > { %3385 = vmatprep.subr.msk.bf16.mxu0 %vm3897_vm1, %v3383_v5  ;;  %v2173_v16 = vsel %vm412_vm0, %v2109_v9, 0.0  ;;  %v3413_v18 = vpack.c.bf16 %v3922_v15, %v3914_v13  ;;  %v3944_v21 = vld [vmem:[%s3873_s21 + $0x60] sm:$0xff]  ;;  %v3947_v22 = vld [vmem:[%s3873_s21 + $0x68] sm:$0xff]  ;;  %v3395_v25 = vpack.c.bf16 %v3941_v20, %v3938_v19  ;;  %v3971_v30 = vld [vmem:[%s3873_s21 + $0x30] sm:$0xff]  ;;  %v2112_v35 = vmul.f32 %v3911_v12, %v3911_v12  ;;  %p3667_p7 = scmp.ne.s32.totalorder %s2785_s27, %s3666_s29  ;;  %p3674_p13 = scmp.lt.s32.totalorder %s3666_s29, %s3666_s29 }
  0x54   : > { %3388 = vmatpush3.bf16.xpose.msk.msra.mxu0 %vm3897_vm1, %v3383_v5  ;;  %3409 = vmatprep.subr.msk.bf16.mxu1 %vm3897_vm1, %v3407_v10  ;;  %v2197_v23 = vsel %vm412_vm0, %v2117_v17, 0.0  ;;  %v3419_v26 = vpack.c.bf16 %v3947_v22, %v3944_v21  ;;  %v3957_v27 = vld [vmem:[%s3873_s21 + $0x80] sm:$0xff]  ;;  %v3974_v31 = vld [vmem:[%s3873_s21 + $0x38] sm:$0xff]  ;;  %v3977_v32 = vld [vmem:[%s3873_s21 + $0x70] sm:$0xff]  ;;  %v2121_v50 = vmul.f32 %v3944_v21, %v3944_v21  ;;  %v2176_v51 = vsel %vm412_vm0, %v2110_v47, 0.0 }
  0x55   : > { %3412 = vmatpush3.bf16.xpose.msk.msra.mxu1 %vm3897_vm1, %v3407_v10  ;;  %3391 = vmatprep.subr.msk.bf16.mxu0 %vm3897_vm1, %v3389_v14  ;;  %v2125_v29 = vmul.f32 %v3957_v27, %v3957_v27  ;;  %v3980_v33 = vld [vmem:[%s3873_s21 + $0x78] sm:$0xff]  ;;  %v3401_v36 = vpack.c.bf16 %v3974_v31, %v3971_v30  ;;  %v3990_v38 = vld [vmem:[%s3873_s21 + $0x90] sm:$0xff]  ;;  %v2182_v39 = vsel %vm412_vm0, %v2112_v35, 0.0  ;;  %v4004_v41 = vld [vmem:[%s3873_s21 + $0xc8] sm:$0xff]  ;;  %v2200_v55 = vsel %vm412_vm0, %v2118_v52, 0.0  ;;  %p3668_p9 = pnand %p3667_p7, %p5117_p8  ;;  %p3675_p0 = por %p3674_p13, %p3673_p11 }
  0x56   : > { %3415 = vmatprep.subr.msk.bf16.mxu1 %vm3897_vm1, %v3413_v18  ;;  %2174 = vadd.xlane.f32.xlu1 %v2173_v16  ;;  %v3425_v37 = vpack.c.bf16 %v3980_v33, %v3977_v32  ;;  %v2127_v40 = vmul.f32 %v3990_v38, %v3990_v38  ;;  %v4007_v42 = vld [vmem:[%s3873_s21 + $0xc0] sm:$0xff]  ;;  %v2134_v44 = vmul.f32 %v4004_v41, %v4004_v41  ;;  %v4013_v45 = vld [vmem:[%s3873_s21 + $0x88] sm:$0xff]  ;;  %v2209_v53 = vsel %vm412_vm0, %v2121_v50, 0.0  ;;  %v4037_v54 = vld [vmem:[%s3873_s21 + $0x98] sm:$0xff] }
  0x57   : > { %v2221_v34 = vsel %vm412_vm0, %v2125_v29, 0.0  ;;  %v3431_v46 = vpack.c.bf16 %v4013_v45, %v3957_v27  ;;  %v3455_v48 = vpack.c.bf16 %v4004_v41, %v4007_v42  ;;  %v2119_v56 = vmul.f32 %v3914_v13, %v3914_v13  ;;  %v4043_v57 = vld [vmem:[%s3873_s21 + $0xd0] sm:$0xff]  ;;  %v4046_v58 = vld [vmem:[%s3873_s21 + $0xd8] sm:$0xff]  ;;  %v4070_v0 = vld [vmem:[%s3873_s21 + $0x108] sm:$0xff]  ;;  %p3669_p10 = pneg %p3668_p9 }
  0x58   : > { %v2227_v43 = vsel %vm412_vm0, %v2127_v40, 0.0  ;;  %v2248_v49 = vsel %vm412_vm0, %v2134_v44, 0.0  ;;  %v3437_v59 = vpack.c.bf16 %v4037_v54, %v3990_v38  ;;  %v2135_v60 = vmul.f32 %v4043_v57, %v4043_v57  ;;  %v4077_v1 = vld [vmem:[%s3873_s21 + $0xa0] sm:$0xff]  ;;  %v4080_v2 = vld [vmem:[%s3873_s21 + $0xa8] sm:$0xff]  ;;  %v4129_v16 = vld [vmem:[%s3873_s21 + $0xb0] sm:$0xff] }
  0x59   : > { %v3461_v61 = vpack.c.bf16 %v4046_v58, %v4043_v57  ;;  %v2203_v62 = vsel %vm412_vm0, %v2119_v56, 0.0  ;;  %v2126_v63 = vmul.f32 %v4013_v45, %v4013_v45  ;;  %v4088_v4 = vld [vmem:[%s3873_s21 + $0xe0] sm:$0xff]  ;;  %v4091_v5 = vld [vmem:[%s3873_s21 + $0xe8] sm:$0xff]  ;;  %v2142_v7 = vmul.f32 %v4070_v0, %v4070_v0  ;;  %v4132_v17 = vld [vmem:[%s3873_s21 + $0xb8] sm:$0xff]  ;;  %p3676_p2 = pnand %p3675_p0, %p3669_p10 }
  0x5a   : > { %2198 = vadd.xlane.f32.xlu1 %v2197_v23  ;;  %v2120_v9 = vmul.f32 %v3922_v15, %v3922_v15  ;;  %v3443_v10 = vpack.c.bf16 %v4080_v2, %v4077_v1  ;;  %v2136_v23 = vmul.f32 %v4046_v58, %v4046_v58  ;;  %v4159_v29 = vld [vmem:[%s3873_s21 + $0x140] sm:$0xff]  ;;  %v2128_v35 = vmul.f32 %v4037_v54, %v4037_v54  ;;  %v4187_v44 = vld [vmem:[%s3873_s21 + $0x148] sm:$0xff]  ;;  %v4206_v50 = vld [vmem:[%s3873_s21 + $0x118] sm:$0xff] }
  0x5b   : > { %v2130_v47 = vmul.f32 %v4080_v2, %v4080_v2  ;;  %v4219_v56 = vld [vmem:[%s3873_s21 + $0x158] sm:$0xff]  ;;  %vm1795_vm7 = vcmask 326912   ;;  %vm1802_vm8 = vcmask 392512   ;;  %vm1809_vm9 = vcmask 458112  }
  0x5c   : > { %3394 = vmatpush3.bf16.xpose.msk.msra.mxu0 %vm3897_vm1, %v3389_v14  ;;  %v2206_v14 = vsel %vm412_vm0, %v2120_v9, 0.0  ;;  %v2230_v40 = vsel %vm412_vm0, %v2128_v35, 0.0  ;;  %v4264_v9 = vld [vmem:[%s3873_s21 + $0x168] sm:$0xff]  ;;  %vm1816_vm10 = vcmask 523712   ;;  %vm2091_vm11 = vcmask 1041409  }
  0x5d   : > { %3418 = vmatpush3.bf16.xpose.msk.msra.mxu1 %vm3897_vm1, %v3413_v18  ;;  %3397 = vmatprep.subr.msk.bf16.mxu0 %vm3897_vm1, %v3395_v25  ;;  %v4137_v18 = vld [vmem:[%s3873_s21 + $0xf0] sm:$0xff]  ;;  %vm2093_vm12 = vcmask 1042434   ;;  %vm2095_vm13 = vcmask 1043459   ;;  %vm2097_vm14 = vcmask 1044484   ;;  %vm2099_vm15 = vcmask 1045509  }
  0x5e   : > { %3421 = vmatprep.subr.msk.bf16.mxu1 %vm3897_vm1, %v3419_v26  ;;  %2180 = vadd.xlane.f32.xlu1 %v2179_v28 }
  0x62   : > { %2222 = vadd.xlane.f32.xlu1 %v2221_v34  ;;  %v2149_v34 = vmul.f32 %v4159_v29, %v4159_v29 }
  0x64   : > { %3400 = vmatpush3.bf16.xpose.msk.msra.mxu0 %vm3897_vm1, %v3395_v25  ;;  %v2113_v25 = vmul.f32 %v3938_v19, %v3938_v19 }
  0x65   : > { %3424 = vmatpush3.bf16.xpose.msk.msra.mxu1 %vm3897_vm1, %v3419_v26  ;;  %3403 = vmatprep.subr.msk.bf16.mxu0 %vm3897_vm1, %v3401_v36  ;;  %v3449_v26 = vpack.c.bf16 %v4132_v17, %v4129_v16 }
  0x66   : > { %3427 = vmatprep.subr.msk.bf16.mxu1 %vm3897_vm1, %v3425_v37  ;;  %2183 = vadd.xlane.f32.xlu1 %v2182_v39  ;;  %v2115_v39 = vmul.f32 %v3971_v30, %v3971_v30 }
  0x6a   : > { %2228 = vadd.xlane.f32.xlu1 %v2227_v43 }
  0x6c   : > { %3406 = vmatpush3.bf16.xpose.msk.msra.mxu0 %vm3897_vm1, %v3401_v36  ;;  %v4174_v36 = vld [vmem:[%s3873_s21 + $0x100] sm:$0xff] }
  0x6d   : > { %3430 = vmatpush3.bf16.xpose.msk.msra.mxu1 %vm3897_vm1, %v3425_v37  ;;  %3433 = vmatprep.subr.msk.bf16.mxu0 %vm3897_vm1, %v3431_v46  ;;  %v2293_v37 = vsel %vm412_vm0, %v2149_v34, 0.0  ;;  %v3479_v43 = vpack.c.bf16 %v4070_v0, %v4174_v36 }
  0x6e   : > { %3457 = vmatprep.subr.msk.bf16.mxu1 %vm3897_vm1, %v3455_v48  ;;  %2249 = vadd.xlane.f32.xlu1 %v2248_v49  ;;  %v2114_v49 = vmul.f32 %v3941_v20, %v3941_v20 }
  0x70   : > { %2177 = vadd.xlane.f32.xlu0 %v2176_v51  ;;  %v2236_v51 = vsel %vm412_vm0, %v2130_v47, 0.0  ;;  %v2188_v52 = vsel %vm412_vm0, %v2114_v49, 0.0  ;;  %v2116_v47 = vmul.f32 %v3974_v31, %v3974_v31 }
  0x72   : > { %2210 = vadd.xlane.f32.xlu1 %v2209_v53  ;;  %v4213_v53 = vld [vmem:[%s3873_s21 + $0x110] sm:$0xff]  ;;  %v2194_v49 = vsel %vm412_vm0, %v2116_v47, 0.0 }
  0x73   : > { %3176 = vmatmul.mubr.msk.f32.vlgmr.msra.gmra.mrb[0].mxu0 %vm412_vm0, %v3892_v3  ;;  %v2251_v3 = vsel %vm412_vm0, %v2135_v60, 0.0  ;;  %v2144_v60 = vmul.f32 %v4206_v50, %v4206_v50 }
  0x74   : > { %3204 = vmatmul.mubr.msk.f32.vlgmr.msra.gmra.mrb[0].mxu1 %vm412_vm0, %v3903_v8  ;;  %3178 = vmatprep.mubr.msk.f32.mxu0 %vm412_vm0, %v3908_v11  ;;  %v2224_v8 = vsel %vm412_vm0, %v2126_v63, 0.0  ;;  %v3467_v11 = vpack.c.bf16 %v4091_v5, %v4088_v4 }
  0x75   : > { %2201 = vadd.xlane.f32.xlu0 %v2200_v55  ;;  %3436 = vmatpush3.bf16.xpose.msk.msra.mxu0 %vm3897_vm1, %v3431_v46  ;;  %v3503_v46 = vpack.c.bf16 %v4187_v44, %v4159_v29  ;;  %v4216_v55 = vld [vmem:[%s3873_s21 + $0x150] sm:$0xff] }
  0x76   : > { %3460 = vmatpush3.bf16.xpose.msk.msra.mxu1 %vm3897_vm1, %v3455_v48  ;;  %3206 = vmatprep.mubr.msk.f32.mxu1 %vm412_vm0, %v3914_v13  ;;  %v2122_v13 = vmul.f32 %v3947_v22, %v3947_v22  ;;  %v2151_v34 = vmul.f32 %v4216_v55, %v4216_v55 }
  0x77   : > { %3179 = vmatmul.mubr.msk.f32.gmra.mrb[2].mxu0 %vm412_vm0, %v3911_v12  ;;  %3439 = vmatprep.subr.msk.bf16.mxu0 %vm3897_vm1, %v3437_v59  ;;  %v2272_v12 = vsel %vm412_vm0, %v2142_v7, 0.0  ;;  %v4249_v7 = vld [vmem:[%s3873_s21 + $0x128] sm:$0xff] }
  0x78   : > { %3207 = vmatmul.mubr.msk.f32.gmra.mrb[2].mxu1 %vm412_vm0, %v3922_v15  ;;  %3181 = vmatprep.mubr.msk.f32.mxu0 %vm412_vm0, %v3938_v19  ;;  %v2133_v15 = vmul.f32 %v4007_v42, %v4007_v42  ;;  %v2254_v19 = vsel %vm412_vm0, %v2136_v23, 0.0 }
  0x79   : > { %2204 = vadd.xlane.f32.xlu0 %v2203_v62  ;;  %3463 = vmatprep.subr.msk.bf16.mxu1 %vm3897_vm1, %v3461_v61  ;;  %v4232_v62 = vld [vmem:[%s3873_s21 + $0x180] sm:$0xff] }
  0x7a   : > { %3209 = vmatprep.mubr.msk.f32.mxu1 %vm412_vm0, %v3944_v21  ;;  %2252 = vadd.xlane.f32.xlu1 %v2251_v3  ;;  %v4140_v21 = vld [vmem:[%s3873_s21 + $0xf8] sm:$0xff]  ;;  %v2245_v24 = vsel %vm412_vm0, %v2133_v15, 0.0  ;;  %v4246_v3 = vld [vmem:[%s3873_s21 + $0x120] sm:$0xff]  ;;  %v4311_v15 = vld [vmem:[%s3873_s21 + $0x170] sm:$0xff] }
  0x7b   : > { %3182 = vmatmul.mubr.msk.f32.gmra.mrb[4].mxu0 %vm412_vm0, %v3941_v20  ;;  %v3473_v28 = vpack.c.bf16 %v4140_v21, %v4137_v18  ;;  %v2129_v20 = vmul.f32 %v4077_v1, %v4077_v1 }
  0x7c   : > { %3210 = vmatmul.mubr.msk.f32.gmra.mrb[4].mxu1 %vm412_vm0, %v3947_v22  ;;  %3184 = vmatprep.mubr.msk.f32.mxu0 %vm412_vm0, %v3971_v30  ;;  %v2212_v22 = vsel %vm412_vm0, %v2122_v13, 0.0  ;;  %v2191_v30 = vsel %vm412_vm0, %v2115_v39, 0.0  ;;  %v2123_v13 = vmul.f32 %v3977_v32, %v3977_v32 }
  0x7d   : > { %2225 = vadd.xlane.f32.xlu0 %v2224_v8  ;;  %3442 = vmatpush3.bf16.xpose.msk.msra.mxu0 %vm3897_vm1, %v3437_v59  ;;  %v3485_v59 = vpack.c.bf16 %v4206_v50, %v4213_v53  ;;  %v2233_v63 = vsel %vm412_vm0, %v2129_v20, 0.0  ;;  %v4261_v8 = vld [vmem:[%s3873_s21 + $0x160] sm:$0xff]  ;;  %v4392_v20 = vld [vmem:[%s3873_s21 + $0x1d8] sm:$0xff] }
  0x7e   : > { %3466 = vmatpush3.bf16.xpose.msk.msra.mxu1 %vm3897_vm1, %v3461_v61  ;;  %3445 = vmatprep.subr.msk.bf16.mxu0 %vm3897_vm1, %v3443_v10  ;;  %v3509_v61 = vpack.c.bf16 %v4219_v56, %v4216_v55  ;;  %v2215_v23 = vsel %vm412_vm0, %v2123_v13, 0.0  ;;  %v4481_v13 = vld [vmem:[%s3873_s21 + $0x1f0] sm:$0xff] }
  0x7f   : > { %3469 = vmatprep.subr.msk.bf16.mxu1 %vm3897_vm1, %v3467_v11  ;;  %3185 = vmatmul.mubr.msk.f32.gmra.mrb[6].mxu0 %vm412_vm0, %v3974_v31  ;;  %v2131_v31 = vmul.f32 %v4129_v16, %v4129_v16  ;;  %v2171_v6 = vmul.f32 %v4481_v13, %v4481_v13 }
  0x80   : > { %3212 = vmatprep.mubr.msk.f32.mxu1 %vm412_vm0, %v3977_v32  ;;  %2273 = vadd.xlane.f32.xlu1 %v2272_v12 }
  0x81   : > { %2207 = vadd.xlane.f32.xlu0 %v2206_v14  ;;  %3213 = vmatmul.mubr.msk.f32.gmra.mrb[6].mxu1 %vm412_vm0, %v3980_v33  ;;  %v2138_v14 = vmul.f32 %v4091_v5, %v4091_v5 }
  0x82   : > { %3231 = vmatprep.mubr.msk.f32.mxu0 %vm412_vm0, %v3957_v27  ;;  %3259 = vmatprep.mubr.msk.f32.mxu1 %vm412_vm0, %v4007_v42  ;;  %v2185_v27 = vsel %vm412_vm0, %v2113_v25, 0.0  ;;  %v2141_v42 = vmul.f32 %v4174_v36, %v4174_v36 }
  0x84   : > { %2213 = vadd.xlane.f32.xlu1 %v2212_v22  ;;  %v2269_v48 = vsel %vm412_vm0, %v2141_v42, 0.0  ;;  %v4314_v22 = vld [vmem:[%s3873_s21 + $0x178] sm:$0xff] }
  0x85   : > { %2246 = vadd.xlane.f32.xlu0 %v2245_v24  ;;  %3448 = vmatpush3.bf16.xpose.msk.msra.mxu0 %vm3897_vm1, %v3443_v10  ;;  %v2137_v24 = vmul.f32 %v4088_v4, %v4088_v4 }
  0x86   : > { %3472 = vmatpush3.bf16.xpose.msk.msra.mxu1 %vm3897_vm1, %v3467_v11  ;;  %3451 = vmatprep.subr.msk.bf16.mxu0 %vm3897_vm1, %v3449_v26  ;;  %v3515_v11 = vpack.c.bf16 %v4264_v9, %v4261_v8 }
  0x87   : > { %3475 = vmatprep.subr.msk.bf16.mxu1 %vm3897_vm1, %v3473_v28 }
  0x88   : > { %2255 = vadd.xlane.f32.xlu1 %v2254_v19  ;;  %v2257_v19 = vsel %vm412_vm0, %v2137_v24, 0.0 }
  0x89   : > { %2186 = vadd.xlane.f32.xlu0 %v2185_v27  ;;  %v4345_v27 = vld [vmem:[%s3873_s21 + $0x188] sm:$0xff] }
  0x8a   : > { %v2158_v39 = vmul.f32 %v4345_v27, %v4345_v27 }
  0x8c   : > { %2294 = vadd.xlane.f32.xlu1 %v2293_v37  ;;  %v2299_v37 = vsel %vm412_vm0, %v2151_v34, 0.0 }
  0x8d   : > { %2231 = vadd.xlane.f32.xlu0 %v2230_v40  ;;  %3454 = vmatpush3.bf16.xpose.msk.msra.mxu0 %vm3897_vm1, %v3449_v26  ;;  %v2260_v26 = vsel %vm412_vm0, %v2138_v14, 0.0  ;;  %v3527_v40 = vpack.c.bf16 %v4345_v27, %v4232_v62  ;;  %v2132_v14 = vmul.f32 %v4132_v17, %v4132_v17 }
  0x8e   : > { %3478 = vmatpush3.bf16.xpose.msk.msra.mxu1 %vm3897_vm1, %v3473_v28  ;;  %3481 = vmatprep.subr.msk.bf16.mxu0 %vm3897_vm1, %v3479_v43  ;;  %v4337_v28 = vld [vmem:[%s3873_s21 + $0x1c0] sm:$0xff] }
  0x8f   : > { %3505 = vmatprep.subr.msk.bf16.mxu1 %vm3897_vm1, %v3503_v46  ;;  %v2165_v35 = vmul.f32 %v4337_v28, %v4337_v28 }
  0x90   : > { %2192 = vadd.xlane.f32.xlu1 %v2191_v30  ;;  %v2320_v30 = vsel %vm412_vm0, %v2158_v39, 0.0 }
  0x91   : > { %2270 = vadd.xlane.f32.xlu0 %v2269_v48  ;;  %v4377_v48 = vld [vmem:[%s3873_s21 + $0x198] sm:$0xff] }
  0x94   : > { %3232 = vmatmul.mubr.msk.f32.vlgmr.msra.gmra.mrb[8].mxu0 %vm412_vm0, %v4013_v45  ;;  %2237 = vadd.xlane.f32.xlu1 %v2236_v51  ;;  %v2143_v45 = vmul.f32 %v4213_v53, %v4213_v53  ;;  %v4386_v51 = vld [vmem:[%s3873_s21 + $0x190] sm:$0xff] }
  0x95   : > { %2189 = vadd.xlane.f32.xlu0 %v2188_v52  ;;  %3484 = vmatpush3.bf16.xpose.msk.msra.mxu0 %vm3897_vm1, %v3479_v43  ;;  %v2341_v43 = vsel %vm412_vm0, %v2165_v35, 0.0  ;;  %v4389_v52 = vld [vmem:[%s3873_s21 + $0x1d0] sm:$0xff] }
  0x96   : > { %3260 = vmatmul.mubr.msk.f32.vlgmr.msra.gmra.mrb[8].mxu1 %vm412_vm0, %v4004_v41  ;;  %3234 = vmatprep.mubr.msk.f32.mxu0 %vm412_vm0, %v3990_v38  ;;  %v2278_v41 = vsel %vm412_vm0, %v2144_v60, 0.0  ;;  %v2157_v38 = vmul.f32 %v4232_v62, %v4232_v62  ;;  %v2275_v10 = vsel %vm412_vm0, %v2143_v45, 0.0  ;;  %v2153_v60 = vmul.f32 %v4261_v8, %v4261_v8  ;;  %v4417_v45 = vld [vmem:[%s3873_s21 + $0x1a0] sm:$0xff] }
  0x97   : > { %3508 = vmatpush3.bf16.xpose.msk.msra.mxu1 %vm3897_vm1, %v3503_v46  ;;  %3487 = vmatprep.subr.msk.bf16.mxu0 %vm3897_vm1, %v3485_v59  ;;  %v2139_v46 = vmul.f32 %v4137_v18, %v4137_v18 }
  0x98   : > { %3235 = vmatmul.mubr.msk.f32.gmra.mrb[10].mxu0 %vm412_vm0, %v4037_v54  ;;  %3262 = vmatprep.mubr.msk.f32.mxu1 %vm412_vm0, %v4043_v57  ;;  %v2150_v54 = vmul.f32 %v4187_v44, %v4187_v44  ;;  %v3491_v57 = vpack.c.bf16 %v4249_v7, %v4246_v3 }
  0x99   : > { %2234 = vadd.xlane.f32.xlu0 %v2233_v63  ;;  %3511 = vmatprep.subr.msk.bf16.mxu1 %vm3897_vm1, %v3509_v61  ;;  %v2145_v63 = vmul.f32 %v4246_v3, %v4246_v3 }
  0x9a   : > { %3263 = vmatmul.mubr.msk.f32.gmra.mrb[10].mxu1 %vm412_vm0, %v4046_v58  ;;  %3237 = vmatprep.mubr.msk.f32.mxu0 %vm412_vm0, %v4077_v1  ;;  %v2317_v58 = vsel %vm412_vm0, %v2157_v38, 0.0  ;;  %v2124_v1 = vmul.f32 %v3980_v33, %v3980_v33  ;;  %v2296_v12 = vsel %vm412_vm0, %v2150_v54, 0.0  ;;  %v4296_v33 = vld [vmem:[%s3873_s21 + $0x130] sm:$0xff]  ;;  %v2167_v38 = vmul.f32 %v4389_v52, %v4389_v52 }
  0x9b   : > { %3265 = vmatprep.mubr.msk.f32.mxu1 %vm412_vm0, %v4088_v4  ;;  %2279 = vadd.xlane.f32.xlu1 %v2278_v41  ;;  %v2152_v4 = vmul.f32 %v4219_v56, %v4219_v56  ;;  %v4420_v41 = vld [vmem:[%s3873_s21 + $0x1a8] sm:$0xff]  ;;  %v2159_v54 = vmul.f32 %v4386_v51, %v4386_v51 }
  0x9c   : > { %3238 = vmatmul.mubr.msk.f32.gmra.mrb[12].mxu0 %vm412_vm0, %v4080_v2  ;;  %v4299_v2 = vld [vmem:[%s3873_s21 + $0x138] sm:$0xff]  ;;  %v2218_v32 = vsel %vm412_vm0, %v2124_v1, 0.0 }
  0x9d   : > { %2276 = vadd.xlane.f32.xlu0 %v2275_v10  ;;  %3490 = vmatpush3.bf16.xpose.msk.msra.mxu0 %vm3897_vm1, %v3485_v59  ;;  %v3497_v25 = vpack.c.bf16 %v4299_v2, %v4296_v33  ;;  %v3533_v59 = vpack.c.bf16 %v4377_v48, %v4386_v51  ;;  %v2281_v10 = vsel %vm412_vm0, %v2145_v63, 0.0  ;;  %v4470_v1 = vld [vmem:[%s3873_s21 + $0x1b8] sm:$0xff] }
  0x9e   : > { %3493 = vmatprep.subr.msk.bf16.mxu0 %vm3897_vm1, %v3491_v57  ;;  %3266 = vmatmul.mubr.msk.f32.gmra.mrb[12].mxu1 %vm412_vm0, %v4091_v5  ;;  %v3521_v5 = vpack.c.bf16 %v4314_v22, %v4311_v15 }
  0x9f   : > { %3514 = vmatpush3.bf16.xpose.msk.msra.mxu1 %vm3897_vm1, %v3509_v61  ;;  %2318 = vadd.xlane.f32.xlu1 %v2317_v58  ;;  %v2239_v61 = vsel %vm412_vm0, %v2131_v31, 0.0  ;;  %v4467_v58 = vld [vmem:[%s3873_s21 + $0x1b0] sm:$0xff]  ;;  %v2148_v31 = vmul.f32 %v4299_v2, %v4299_v2 }
  0xa0   : > { %3517 = vmatprep.subr.msk.bf16.mxu1 %vm3897_vm1, %v3515_v11  ;;  %3240 = vmatprep.mubr.msk.f32.mxu0 %vm412_vm0, %v4129_v16  ;;  %v3557_v16 = vpack.c.bf16 %v4392_v20, %v4389_v52 }
  0xa1   : > { %2297 = vadd.xlane.f32.xlu0 %v2296_v12  ;;  %3241 = vmatmul.mubr.msk.f32.gmra.mrb[14].mxu0 %vm412_vm0, %v4132_v17  ;;  %v2161_v12 = vmul.f32 %v4417_v45, %v4417_v45 }
  0xa2   : > { %3268 = vmatprep.mubr.msk.f32.mxu1 %vm412_vm0, %v4137_v18  ;;  %3287 = vmatprep.mubr.msk.f32.mxu0 %vm412_vm0, %v4174_v36  ;;  %v4355_v36 = vld [vmem:[%s3873_s21 + $0x1c8] sm:$0xff]  ;;  %v2263_v18 = vsel %vm412_vm0, %v2139_v46, 0.0 }
  0xa3   : > { %2219 = vadd.xlane.f32.xlu1 %v2218_v32  ;;  %3269 = vmatmul.mubr.msk.f32.gmra.mrb[14].mxu1 %vm412_vm0, %v4140_v21  ;;  %v3551_v42 = vpack.c.bf16 %v4355_v36, %v4337_v28  ;;  %v2329_v24 = vsel %vm412_vm0, %v2161_v12, 0.0 }
  0xa4   : > { %3315 = vmatprep.mubr.msk.f32.mxu1 %vm412_vm0, %v4159_v29  ;;  %v2302_v29 = vsel %vm412_vm0, %v2152_v4, 0.0  ;;  %v2160_v4 = vmul.f32 %v4377_v48, %v4377_v48 }
  0xa5   : > { %2216 = vadd.xlane.f32.xlu0 %v2215_v23  ;;  %3496 = vmatpush3.bf16.xpose.msk.msra.mxu0 %vm3897_vm1, %v3491_v57  ;;  %v2147_v57 = vmul.f32 %v4296_v33, %v4296_v33  ;;  %v3545_v23 = vpack.c.bf16 %v4470_v1, %v4467_v58 }
  0xa6   : > { %3499 = vmatprep.subr.msk.bf16.mxu0 %vm3897_vm1, %v3497_v25 }
  0xa7   : > { %3520 = vmatpush3.bf16.xpose.msk.msra.mxu1 %vm3897_vm1, %v3515_v11  ;;  %2261 = vadd.xlane.f32.xlu1 %v2260_v26  ;;  %v2287_v11 = vsel %vm412_vm0, %v2147_v57, 0.0  ;;  %v2146_v26 = vmul.f32 %v4249_v7, %v4249_v7 }
  0xa8   : > { %3523 = vmatprep.subr.msk.bf16.mxu1 %vm3897_vm1, %v3521_v5 }
  0xa9   : > { %2258 = vadd.xlane.f32.xlu0 %v2257_v19  ;;  %v389_v19 = vlaneseq }
  0xab   : > { %2303 = vadd.xlane.f32.xlu1 %v2302_v29  ;;  %v2156_v29 = vmul.f32 %v4314_v22, %v4314_v22  ;;  %v4528_v35 = vand.u32 127, %v389_v19 }
  0xad   : > { %2300 = vadd.xlane.f32.xlu0 %v2299_v37  ;;  %3502 = vmatpush3.bf16.xpose.msk.msra.mxu0 %vm3897_vm1, %v3497_v25  ;;  %v2155_v25 = vmul.f32 %v4311_v15, %v4311_v15  ;;  %v2314_v37 = vsel %vm412_vm0, %v2156_v29, 0.0  ;;  %v1790_v29 = vadd.s32 4294967264, %v4528_v35 }
  0xae   : > { %3529 = vmatprep.subr.msk.bf16.mxu0 %vm3897_vm1, %v3527_v40 }
  0xaf   : > { %3526 = vmatpush3.bf16.xpose.msk.msra.mxu1 %vm3897_vm1, %v3521_v5  ;;  %2342 = vadd.xlane.f32.xlu1 %v2341_v43  ;;  %v2242_v5 = vsel %vm412_vm0, %v2132_v14, 0.0  ;;  %v4618_v14 = vshrl.u32 %v389_v19, 7 }
  0xb0   : > { %3553 = vmatprep.subr.msk.bf16.mxu1 %vm3897_vm1, %v3551_v42 }
  0xb1   : > { %2321 = vadd.xlane.f32.xlu0 %v2320_v30 }
  0xb3   : > { %2264 = vadd.xlane.f32.xlu1 %v2263_v18  ;;  %v2359_v18 = vsel %vm412_vm0, %v2171_v6, 0.0  ;;  %v4654_v6 = vsub.s32 %v1790_v29, %v4618_v14 }
  0xb4   : > { %3288 = vmatmul.mubr.msk.f32.vlgmr.msra.gmra.mrb[16].mxu0 %vm412_vm0, %v4070_v0  ;;  %v2305_v0 = vsel %vm412_vm0, %v2153_v60, 0.0 }
  0xb5   : > { %2195 = vadd.xlane.f32.xlu0 %v2194_v49  ;;  %3532 = vmatpush3.bf16.xpose.msk.msra.mxu0 %vm3897_vm1, %v3527_v40  ;;  %v320_v40 = vld [vmem:[%s3884_s23] sm:$0xff] }
  0xb6   : > { %3316 = vmatmul.mubr.msk.f32.vlgmr.msra.gmra.mrb[16].mxu1 %vm412_vm0, %v4187_v44  ;;  %3290 = vmatprep.mubr.msk.f32.mxu0 %vm412_vm0, %v4213_v53  ;;  %v4431_v44 = vld [vmem:[%s3873_s21 + $0x1e0] sm:$0xff]  ;;  %v4434_v53 = vld [vmem:[%s3873_s21 + $0x1e8] sm:$0xff] }
  0xb7   : > { %3556 = vmatpush3.bf16.xpose.msk.msra.mxu1 %vm3897_vm1, %v3551_v42  ;;  %3535 = vmatprep.subr.msk.bf16.mxu0 %vm3897_vm1, %v3533_v59  ;;  %v2170_v39 = vmul.f32 %v4434_v53, %v4434_v53  ;;  %v2140_v42 = vmul.f32 %v4140_v21, %v4140_v21  ;;  %v2154_v21 = vmul.f32 %v4264_v9, %v4264_v9 }
  0xb8   : > { %3291 = vmatmul.mubr.msk.f32.gmra.mrb[18].mxu0 %vm412_vm0, %v4206_v50  ;;  %3318 = vmatprep.mubr.msk.f32.mxu1 %vm412_vm0, %v4216_v55  ;;  %v3539_v50 = vpack.c.bf16 %v4420_v41, %v4417_v45  ;;  %v2347_v55 = vsel %vm412_vm0, %v2167_v38, 0.0 }
  0xb9   : > { %2240 = vadd.xlane.f32.xlu0 %v2239_v61  ;;  %3559 = vmatprep.subr.msk.bf16.mxu1 %vm3897_vm1, %v3557_v16  ;;  %v2356_v46 = vsel %vm412_vm0, %v2170_v39, 0.0  ;;  %v2266_v47 = vsel %vm412_vm0, %v2140_v42, 0.0  ;;  %v2164_v61 = vmul.f32 %v4470_v1, %v4470_v1 }
  0xba   : > { %3319 = vmatmul.mubr.msk.f32.gmra.mrb[18].mxu1 %vm412_vm0, %v4219_v56  ;;  %2306 = vadd.xlane.f32.xlu1 %v2305_v0  ;;  %v3563_v56 = vpack.c.bf16 %v4434_v53, %v4431_v44 }
  0xbb   : > { %3293 = vmatprep.mubr.msk.f32.mxu0 %vm412_vm0, %v4246_v3  ;;  %3321 = vmatprep.mubr.msk.f32.mxu1 %vm412_vm0, %v4261_v8  ;;  %v2323_v3 = vsel %vm412_vm0, %v2159_v54, 0.0  ;;  %v2166_v8 = vmul.f32 %v4355_v36, %v4355_v36  ;;  %v2338_v0 = vsel %vm412_vm0, %v2164_v61, 0.0 }
  0xbc   : > { %3294 = vmatmul.mubr.msk.f32.gmra.mrb[20].mxu0 %vm412_vm0, %v4249_v7  ;;  %v2284_v7 = vsel %vm412_vm0, %v2146_v26, 0.0  ;;  %v4629_v26 = vsub.s32 %v4528_v35, %v4618_v14 }
  0xbd   : > { %2282 = vadd.xlane.f32.xlu0 %v2281_v10  ;;  %3538 = vmatpush3.bf16.xpose.msk.msra.mxu0 %vm3897_vm1, %v3533_v59  ;;  %v2344_v32 = vsel %vm412_vm0, %v2166_v8, 0.0  ;;  %v2163_v59 = vmul.f32 %v4467_v58, %v4467_v58 }
  0xbe   : > { %3541 = vmatprep.subr.msk.bf16.mxu0 %vm3897_vm1, %v3539_v50  ;;  %2348 = vadd.xlane.f32.xlu1 %v2347_v55 }
  0xbf   : > { %3562 = vmatpush3.bf16.xpose.msk.msra.mxu1 %vm3897_vm1, %v3557_v16  ;;  %3296 = vmatprep.mubr.msk.f32.mxu0 %vm412_vm0, %v4296_v33  ;;  %v4484_v33 = vld [vmem:[%s3873_s21 + $0x1f8] sm:$0xff]  ;;  %v2335_v16 = vsel %vm412_vm0, %v2163_v59, 0.0 }
  0xc0   : > { %3322 = vmatmul.mubr.msk.f32.gmra.mrb[20].mxu1 %vm412_vm0, %v4264_v9  ;;  %3565 = vmatprep.subr.msk.bf16.mxu1 %vm3897_vm1, %v3563_v56  ;;  %v3569_v17 = vpack.c.bf16 %v4484_v33, %v4481_v13  ;;  %v2308_v9 = vsel %vm412_vm0, %v2154_v21, 0.0 }
  0xc1   : > { %2324 = vadd.xlane.f32.xlu0 %v2323_v3  ;;  %3297 = vmatmul.mubr.msk.f32.gmra.mrb[22].mxu0 %vm412_vm0, %v4299_v2 }
  0xc2   : > { %2288 = vadd.xlane.f32.xlu1 %v2287_v11  ;;  %3324 = vmatprep.mubr.msk.f32.mxu1 %vm412_vm0, %v4311_v15  ;;  %v2169_v15 = vmul.f32 %v4431_v44, %v4431_v44 }
  0xc3   : > { %3343 = vmatprep.mubr.msk.f32.mxu0 %vm412_vm0, %v4232_v62  ;;  %v2311_v62 = vsel %vm412_vm0, %v2155_v25, 0.0 }
  0xc4   : > { %3325 = vmatmul.mubr.msk.f32.gmra.mrb[22].mxu1 %vm412_vm0, %v4314_v22  ;;  %v2353_v34 = vsel %vm412_vm0, %v2169_v15, 0.0  ;;  %v1783_v15 = vadd.s32 4294967272, %v4528_v35 }
  0xc5   : > { %2345 = vadd.xlane.f32.xlu0 %v2344_v32  ;;  %3544 = vmatpush3.bf16.xpose.msk.msra.mxu0 %vm3897_vm1, %v3539_v50 }
  0xc6   : > { %3547 = vmatprep.subr.msk.bf16.mxu0 %vm3897_vm1, %v3545_v23  ;;  %2330 = vadd.xlane.f32.xlu1 %v2329_v24 }
  0xc7   : > { %3568 = vmatpush3.bf16.xpose.msk.msra.mxu1 %vm3897_vm1, %v3563_v56  ;;  %3371 = vmatprep.mubr.msk.f32.mxu1 %vm412_vm0, %v4337_v28  ;;  %v2326_v28 = vsel %vm412_vm0, %v2160_v4, 0.0 }
  0xc8   : > { %3571 = vmatprep.subr.msk.bf16.mxu1 %vm3897_vm1, %v3569_v17 }
  0xc9   : > { %2243 = vadd.xlane.f32.xlu0 %v2242_v5 }
  0xca   : > { %2312 = vadd.xlane.f32.xlu1 %v2311_v62 }
  0xcd   : > { %2285 = vadd.xlane.f32.xlu0 %v2284_v7  ;;  %3550 = vmatpush3.bf16.xpose.msk.msra.mxu0 %vm3897_vm1, %v3545_v23  ;;  %v1769_v23 = vadd.s32 4294967288, %v4528_v35 }
  0xce   : > { %2354 = vadd.xlane.f32.xlu1 %v2353_v34 }
  0xcf   : > { %3574 = vmatpush3.bf16.xpose.msk.msra.mxu1 %vm3897_vm1, %v3569_v17  ;;  %v1776_v17 = vadd.s32 4294967280, %v4528_v35  ;;  %v4625_v5 = vsub.s32 %v1769_v23, %v4618_v14  ;;  %vm2101_vm1 = vcmask 1046534  }
  0xd0   : > { %v398_v22 = vpop.permute.xlu0 %397 }
  0xd1   : > { %2327 = vadd.xlane.f32.xlu0 %v2326_v28  ;;  %vm399_vm3 = vcmp.eq.s32.totalorder %v4528_v35, %v398_v22  ;;  %v4635_v7 = vsub.s32 %v1776_v17, %v4618_v14 }
  0xd2   : > { %2315 = vadd.xlane.f32.xlu1 %v2314_v37  ;;  %v400_v43 = vsel %vm399_vm3, %v320_v40, 0.0  ;;  %v4647_v40 = vsub.s32 %v1783_v15, %v4618_v14 }
  0xd3   : > { %v402_v30 = vsel %vm401_vm2, %v400_v43, 0.0  ;;  %v1797_v43 = vadd.s32 4294967256, %v4528_v35  ;;  %vm2103_vm2 = vcmask 1047559  }
  0xd4   : > { %3344 = vmatmul.mubr.msk.f32.vlgmr.msra.gmra.mrb[24].mxu0 %vm412_vm0, %v4345_v27  ;;  %v2172_v27 = vmul.f32 %v4484_v33, %v4484_v33 }
  0xd5   : > { %403 = vadd.xlane.f32.xlu0 %v402_v30  ;;  %3346 = vmatprep.mubr.msk.f32.mxu0 %vm412_vm0, %v4386_v51  ;;  %v2290_v51 = vsel %vm412_vm0, %v2148_v31, 0.0 }
  0xd6   : > { %3372 = vmatmul.mubr.msk.f32.vlgmr.msra.gmra.mrb[24].mxu1 %vm412_vm0, %v4355_v36  ;;  %2357 = vadd.xlane.f32.xlu1 %v2356_v46  ;;  %v2168_v36 = vmul.f32 %v4392_v20, %v4392_v20  ;;  %v2362_v49 = vsel %vm412_vm0, %v2172_v27, 0.0 }
  0xd7   : > { %3374 = vmatprep.mubr.msk.f32.mxu1 %vm412_vm0, %v4389_v52  ;;  %v2162_v52 = vmul.f32 %v4420_v41, %v4420_v41 }
  0xd8   : > { %3347 = vmatmul.mubr.msk.f32.gmra.mrb[26].mxu0 %vm412_vm0, %v4377_v48  ;;  %v2350_v48 = vsel %vm412_vm0, %v2168_v36, 0.0 }
  0xd9   : > { %2267 = vadd.xlane.f32.xlu0 %v2266_v47  ;;  %3349 = vmatprep.mubr.msk.f32.mxu0 %vm412_vm0, %v4417_v45 }
  0xda   : > { %3375 = vmatmul.mubr.msk.f32.gmra.mrb[26].mxu1 %vm412_vm0, %v4392_v20  ;;  %2360 = vadd.xlane.f32.xlu1 %v2359_v18  ;;  %v2332_v20 = vsel %vm412_vm0, %v2162_v52, 0.0 }
  0xdb   : > { %3377 = vmatprep.mubr.msk.f32.mxu1 %vm412_vm0, %v4431_v44 }
  0xdc   : > { %3350 = vmatmul.mubr.msk.f32.gmra.mrb[28].mxu0 %vm412_vm0, %v4420_v41 }
  0xdd   : > { %2309 = vadd.xlane.f32.xlu0 %v2308_v9  ;;  %3352 = vmatprep.mubr.msk.f32.mxu0 %vm412_vm0, %v4467_v58  ;;  %v1804_v9 = vadd.s32 4294967248, %v4528_v35 }
  0xde   : > { %2363 = vadd.xlane.f32.xlu1 %v2362_v49  ;;  %3378 = vmatmul.mubr.msk.f32.gmra.mrb[28].mxu1 %vm412_vm0, %v4434_v53  ;;  %v4665_v49 = vsub.s32 %v1797_v43, %v4618_v14 }
  0xdf   : > { %3380 = vmatprep.mubr.msk.f32.mxu1 %vm412_vm0, %v4481_v13  ;;  %v4675_v59 = vsub.s32 %v1804_v9, %v4618_v14 }
  0xe0   : > { %3353 = vmatmul.mubr.msk.f32.gmra.mrb[30].mxu0 %vm412_vm0, %v4470_v1 }
  0xe1   : > { %2351 = vadd.xlane.f32.xlu0 %v2350_v48 }
  0xe2   : > { %3381 = vmatmul.mubr.msk.f32.gmra.mrb[30].mxu1 %vm412_vm0, %v4484_v33 }
  0xe3   : > { %v2175_v2 = vpop.xlane.xlu1 %2174 }
  0xe4   : > { %v2432_v39 = vrot.slane %v2175_v2, %v4629_v26  ;;  %v1811_v2 = vadd.s32 4294967240, %v4528_v35 }
  0xe5   : > { %2291 = vadd.xlane.f32.xlu0 %v2290_v51 }
  0xe6   : > { %v4686_v35 = vsub.s32 %v1811_v2, %v4618_v14 }
  0xe7   : > { %v2199_v60 = vpop.xlane.xlu1 %2198 }
  0xe8   : > { %v2471_v34 = vrot.slane %v2199_v60, %v4629_v26 }
  0xe9   : > { %2333 = vadd.xlane.f32.xlu0 %v2332_v20 }
  0xeb   : > { %v2181_v63 = vpop.xlane.xlu1 %2180 }
  0xec   : > { %v2441_v46 = vrot.slane %v2181_v63, %v4635_v7 }
  0xed   : > { %2336 = vadd.xlane.f32.xlu0 %v2335_v16 }
  0xef   : > { %v4593_v45 = vpop.xlane.xlu1 %2222 }
  0xf1   : > { %2339 = vadd.xlane.f32.xlu0 %v2338_v0 }
  0xf3   : > { %v4595_v41 = vpop.xlane.xlu1 %2183 }
  0xf4   : > { %v2446_v36 = vrot.slane %v4595_v41, %v4647_v40 }
  0xf7   : > { %v4597_v38 = vpop.xlane.xlu1 %2228 }
  0xfb   : > { %v4599_v44 = vpop.xlane.xlu1 %2249 }
  0xfd   : > { %v2178_v53 = vpop.xlane.xlu0 %2177 }
  0xfe   : > { %v2436_v37 = vrot.slane %v2178_v53, %v4625_v5 }
  0xff   : > { %v2211_v54 = vpop.xlane.xlu1 %2210 }
 0x100   : > { %v2437_v21 = vsel %vm1774_vm4, %v2436_v37, %v2432_v39  ;;  %v2490_v31 = vrot.slane %v2211_v54, %v4654_v6 }
 0x101   : > { %v2442_v48 = vsel %vm1781_vm5, %v2441_v46, %v2437_v21 }
 0x102   : > { %v2202_v10 = vpop.xlane.xlu0 %2201  ;;  %v2447_v16 = vsel %vm1788_vm6, %v2446_v36, %v2442_v48 }
 0x103   : > { %v2475_v19 = vrot.slane %v2202_v10, %v4625_v5 }
 0x105   : > { %v2476_v42 = vsel %vm1774_vm4, %v2475_v19, %v2471_v34 }
 0x106   : > { %v2205_v50 = vpop.xlane.xlu0 %2204 }
 0x107   : > { %v4601_v55 = vpop.xlane.xlu1 %2252  ;;  %v2480_v22 = vrot.slane %v2205_v50, %v4635_v7 }
 0x109   : > { %v2481_v27 = vsel %vm1781_vm5, %v2480_v22, %v2476_v42 }
 0x10a   : > { %v4603_v57 = vpop.xlane.xlu0 %2225 }
 0x10d   : > { %v4605_v3 = vpop.xlane.xlu1 %2273 }
 0x10e   : > { %v2208_v56 = vpop.xlane.xlu0 %2207 }
 0x10f   : > { %v2485_v18 = vrot.slane %v2208_v56, %v4647_v40 }
 0x111   : > { %v2214_v11 = vpop.xlane.xlu1 %2213  ;;  %v2486_v52 = vsel %vm1788_vm6, %v2485_v18, %v2481_v27 }
 0x112   : > { %v4607_v8 = vpop.xlane.xlu0 %2246  ;;  %v2495_v61 = vrot.slane %v2214_v11, %v4665_v49  ;;  %v2491_v63 = vsel %vm1795_vm7, %v2490_v31, %v2486_v52 }
 0x114   : > { %v2496_v54 = vsel %vm1802_vm8, %v2495_v61, %v2491_v63 }
 0x115   : > { %v4611_v12 = vpop.xlane.xlu1 %2255 }
 0x116   : > { %v2187_v58 = vpop.xlane.xlu0 %2186 }
 0x117   : > { %v2451_v20 = vrot.slane %v2187_v58, %v4654_v6 }
 0x119   : > { %v4615_v33 = vpop.xlane.xlu1 %2294  ;;  %v2452_v53 = vsel %vm1795_vm7, %v2451_v20, %v2447_v16 }
 0x11a   : > { %v4609_v1 = vpop.xlane.xlu0 %2231 }
 0x11d   : > { %v2193_v25 = vpop.xlane.xlu1 %2192 }
 0x11e   : > { %v4613_v13 = vpop.xlane.xlu0 %2270  ;;  %v2461_v50 = vrot.slane %v2193_v25, %v4675_v59 }
 0x121   : > { %v4637_v4 = vpop.xlane.xlu1 %2237 }
 0x122   : > { %v2190_v32 = vpop.xlane.xlu0 %2189 }
 0x123   : > { %v2456_v41 = vrot.slane %v2190_v32, %v4665_v49 }
 0x125   : > { %v2457_v58 = vsel %vm1802_vm8, %v2456_v41, %v2452_v53 }
 0x126   : > { %v4621_v24 = vpop.xlane.xlu0 %2234  ;;  %v2462_v17 = vsel %vm1809_vm9, %v2461_v50, %v2457_v58  ;;  %v2514_v58 = vrot.slane %v4603_v57, %v4625_v5  ;;  %v2553_v57 = vrot.slane %v4599_v44, %v4625_v5  ;;  %v2558_v44 = vrot.slane %v4601_v55, %v4635_v7 }
 0x128   : > { %v4656_v47 = vpop.xlane.xlu1 %2279 }
 0x12a   : > { %v4631_v62 = vpop.xlane.xlu0 %2276 }
 0x12c   : > { %v4677_v60 = vpop.xlane.xlu1 %2318 }
 0x12e   : > { %v4642_v28 = vpop.xlane.xlu0 %2297 }
 0x130   : > { %v2220_v11 = vpop.xlane.xlu1 %2219 }
 0x131   : > { %v2505_v23 = vrot.slane %v2220_v11, %v4686_v35 }
 0x132   : > { %v2217_v30 = vpop.xlane.xlu0 %2216 }
 0x133   : > { %v2500_v10 = vrot.slane %v2217_v30, %v4675_v59 }
 0x134   : > { %v4710_v16 = vpop.xlane.xlu1 %2261 }
 0x135   : > { %v2501_v32 = vsel %vm1809_vm9, %v2500_v10, %v2496_v54 }
 0x136   : > { %v4669_v51 = vpop.xlane.xlu0 %2258  ;;  %v2506_v34 = vsel %vm1816_vm10, %v2505_v23, %v2501_v32  ;;  %v2510_v23 = vrot.slane %v4593_v45, %v4629_v26 }
 0x13a   : > { %v4682_v0 = vpop.xlane.xlu0 %2300 }
 0x13e   : > { %v4692_v56 = vpop.xlane.xlu0 %2321 }
 0x142   : > { %v2196_v15 = vpop.xlane.xlu0 %2195 }
 0x143   : > { %v2466_v19 = vrot.slane %v2196_v15, %v4686_v35 }
 0x145   : > { %v2467_v25 = vsel %vm1816_vm10, %v2466_v19, %v2462_v17 }
 0x146   : > { %v3177_v29 = vpop.f32.mrb[0].mxu0  ;;  %v4701_v37 = vpop.xlane.xlu0 %2240  ;;  %v4704_v39 = vsel %vm2091_vm11, %v2506_v34, %v2467_v25  ;;  %v2549_v25 = vrot.slane %v4607_v8, %v4629_v26 }
 0x147   : > { %v1446_v22 = vmul.f32 %v3177_v29, %v3177_v29  ;;  %v503_v42 = vpop.f32.mrb[1].mxu0  ;;  %v3205_v43 = vpop.f32.mrb[0].mxu1  ;;  %v2519_v29 = vrot.slane %v4597_v38, %v4635_v7  ;;  %v2524_v38 = vrot.slane %v4609_v1, %v4647_v40 }
 0x148   : > { %v1454_v46 = vmul.f32 %v3205_v43, %v3205_v43  ;;  %v632_v30 = vpop.f32.mrb[1].mxu1  ;;  %v1445_v21 = vmul.f32 %v503_v42, %v503_v42  ;;  %v2515_v42 = vsel %vm1774_vm4, %v2514_v58, %v2510_v23 }
 0x149   : > { %v1512_v18 = vsel %vm412_vm0, %v1446_v22, 0.0  ;;  %v1453_v48 = vmul.f32 %v632_v30, %v632_v30 }
 0x14a   : > { %1513 = vadd.xlane.f32.xlu1 %v1512_v18  ;;  %v4707_v27 = vpop.xlane.xlu0 %2282  ;;  %v3180_v9 = vpop.f32.mrb[2].mxu0  ;;  %v1536_v36 = vsel %vm412_vm0, %v1454_v46, 0.0  ;;  %v1509_v61 = vsel %vm412_vm0, %v1445_v21, 0.0 }
 0x14b   : > { %1537 = vadd.xlane.f32.xlu0 %v1536_v36  ;;  %v513_v31 = vpop.f32.mrb[3].mxu0  ;;  %v3208_v52 = vpop.f32.mrb[2].mxu1  ;;  %v1448_v10 = vmul.f32 %v3180_v9, %v3180_v9  ;;  %v1533_v54 = vsel %vm412_vm0, %v1453_v48, 0.0  ;;  %v2520_v9 = vsel %vm1781_vm5, %v2519_v29, %v2515_v42  ;;  %v2554_v36 = vsel %vm1774_vm4, %v2553_v57, %v2549_v25 }
 0x14c   : > { %v1456_v2 = vmul.f32 %v3208_v52, %v3208_v52  ;;  %v642_v20 = vpop.f32.mrb[3].mxu1  ;;  %v4734_v46 = vpop.xlane.xlu1 %2303  ;;  %v1447_v30 = vmul.f32 %v513_v31, %v513_v31  ;;  %v2529_v31 = vrot.slane %v4621_v24, %v4654_v6  ;;  %v2525_v55 = vsel %vm1788_vm6, %v2524_v38, %v2520_v9 }
 0x14d   : > { %v1518_v22 = vsel %vm412_vm0, %v1448_v10, 0.0  ;;  %v1455_v48 = vmul.f32 %v642_v20, %v642_v20  ;;  %v2568_v24 = vrot.slane %v4669_v51, %v4654_v6 }
 0x14e   : > { %1510 = vadd.xlane.f32.xlu1 %v1509_v61  ;;  %v4713_v63 = vpop.xlane.xlu0 %2324  ;;  %v3183_v41 = vpop.f32.mrb[4].mxu0  ;;  %v1542_v53 = vsel %vm412_vm0, %v1456_v2, 0.0  ;;  %v2563_v2 = vrot.slane %v4611_v12, %v4647_v40  ;;  %v1515_v1 = vsel %vm412_vm0, %v1447_v30, 0.0  ;;  %v2559_v61 = vsel %vm1781_vm5, %v2558_v44, %v2554_v36 }
 0x14f   : > { %1543 = vadd.xlane.f32.xlu0 %v1542_v53  ;;  %v523_v50 = vpop.f32.mrb[5].mxu0  ;;  %v3211_v11 = vpop.f32.mrb[4].mxu1  ;;  %v1450_v20 = vmul.f32 %v3183_v41, %v3183_v41  ;;  %v2534_v12 = vrot.slane %v4637_v4, %v4665_v49  ;;  %v2573_v41 = vrot.slane %v4710_v16, %v4665_v49 }
 0x150   : > { %v1458_v32 = vmul.f32 %v3211_v11, %v3211_v11  ;;  %v652_v17 = vpop.f32.mrb[5].mxu1  ;;  %v4754_v10 = vpop.xlane.xlu1 %2342  ;;  %v2530_v11 = vsel %vm1795_vm7, %v2529_v31, %v2525_v55  ;;  %v2564_v58 = vsel %vm1788_vm6, %v2563_v2, %v2559_v61  ;;  %v1449_v29 = vmul.f32 %v523_v50, %v523_v50 }
 0x151   : > { %v2569_v51 = vsel %vm1795_vm7, %v2568_v24, %v2564_v58  ;;  %v2535_v25 = vsel %vm1802_vm8, %v2534_v12, %v2530_v11  ;;  %v1457_v16 = vmul.f32 %v652_v17, %v652_v17 }
 0x152   : > { %1534 = vadd.xlane.f32.xlu1 %v1533_v54  ;;  %v4721_v15 = vpop.xlane.xlu0 %2345  ;;  %v3186_v19 = vpop.f32.mrb[6].mxu0  ;;  %v1548_v34 = vsel %vm412_vm0, %v1458_v32, 0.0  ;;  %v1539_v54 = vsel %vm412_vm0, %v1455_v48, 0.0  ;;  %v2539_v32 = vrot.slane %v4701_v37, %v4675_v59  ;;  %v1521_v30 = vsel %vm412_vm0, %v1449_v29, 0.0 }
 0x153   : > { %1549 = vadd.xlane.f32.xlu0 %v1548_v34  ;;  %v4731_v45 = vpop.f32.mrb[7].mxu0  ;;  %v1524_v34 = vsel %vm412_vm0, %v1450_v20, 0.0  ;;  %v1545_v9 = vsel %vm412_vm0, %v1457_v16, 0.0 }
 0x154   : > { %v3214_v43 = vpop.f32.mrb[6].mxu1  ;;  %v2265_v4 = vpop.xlane.xlu1 %2264  ;;  %v2540_v37 = vsel %vm1809_vm9, %v2539_v32, %v2535_v25 }
 0x155   : > { %v1460_v21 = vmul.f32 %v3214_v43, %v3214_v43  ;;  %v4736_v18 = vpop.f32.mrb[7].mxu1  ;;  %v2574_v43 = vsel %vm1802_vm8, %v2573_v41, %v2569_v51 }
 0x156   : > { %1519 = vadd.xlane.f32.xlu1 %v1518_v22  ;;  %v2244_v8 = vpop.xlane.xlu0 %2243  ;;  %v2578_v22 = vrot.slane %v2265_v4, %v4675_v59  ;;  %v1459_v41 = vmul.f32 %v4736_v18, %v4736_v18 }
 0x157   : > { %v1554_v52 = vsel %vm412_vm0, %v1460_v21, 0.0  ;;  %v2544_v57 = vrot.slane %v2244_v8, %v4686_v35  ;;  %v1452_v8 = vmul.f32 %v3186_v19, %v3186_v19 }
 0x158   : > { %1555 = vadd.xlane.f32.xlu0 %v1554_v52  ;;  %v2579_v38 = vsel %vm1809_vm9, %v2578_v22, %v2574_v43 }
 0x159   : > { %v2545_v21 = vsel %vm1816_vm10, %v2544_v57, %v2540_v37  ;;  %v1530_v19 = vsel %vm412_vm0, %v1452_v8, 0.0 }
 0x15a   : > { %1516 = vadd.xlane.f32.xlu1 %v1515_v1  ;;  %v4752_v53 = vpop.xlane.xlu0 %2285  ;;  %v2742_v17 = vsel %vm2093_vm12, %v2545_v21, %v4704_v39  ;;  %v1451_v39 = vmul.f32 %v4731_v45, %v4731_v45  ;;  %v1551_v45 = vsel %vm412_vm0, %v1459_v41, 0.0 }
 0x15c   : > { %v1527_v29 = vsel %vm412_vm0, %v1451_v39, 0.0 }
 0x15e   : > { %1540 = vadd.xlane.f32.xlu1 %v1539_v54  ;;  %v4763_v23 = vpop.xlane.xlu0 %2327 }
 0x162   : > { %1525 = vadd.xlane.f32.xlu1 %v1524_v34  ;;  %v4774_v42 = vpop.xlane.xlu0 %403 }
 0x166   : > { %1522 = vadd.xlane.f32.xlu1 %v1521_v30  ;;  %v2268_v50 = vpop.xlane.xlu0 %2267 }
 0x167   : > { %v2583_v44 = vrot.slane %v2268_v50, %v4686_v35  ;;  %v3233_v36 = vpop.f32.mrb[8].mxu0 }
 0x168   : > { %v1462_v48 = vmul.f32 %v3233_v36, %v3233_v36  ;;  %v761_v52 = vpop.f32.mrb[9].mxu0 }
 0x169   : > { %v2584_v31 = vsel %vm1816_vm10, %v2583_v44, %v2579_v38  ;;  %v3261_v2 = vpop.f32.mrb[8].mxu1  ;;  %v1461_v37 = vmul.f32 %v761_v52, %v761_v52 }
 0x16a   : > { %v4787_v1 = vsel %vm2095_vm13, %v2584_v31, %v2742_v17  ;;  %1546 = vadd.xlane.f32.xlu1 %v1545_v9  ;;  %v1470_v55 = vmul.f32 %v3261_v2, %v3261_v2  ;;  %v1560_v61 = vsel %vm412_vm0, %v1462_v48, 0.0  ;;  %v890_v20 = vpop.f32.mrb[9].mxu1 }
 0x16b   : > { %1561 = vadd.xlane.f32.xlu0 %v1560_v61  ;;  %v3236_v54 = vpop.f32.mrb[10].mxu0  ;;  %v1557_v38 = vsel %vm412_vm0, %v1461_v37, 0.0  ;;  %v1469_v9 = vmul.f32 %v890_v20, %v890_v20 }
 0x16c   : > { %v1464_v24 = vmul.f32 %v3236_v54, %v3236_v54  ;;  %v1584_v12 = vsel %vm412_vm0, %v1470_v55, 0.0  ;;  %v771_v11 = vpop.f32.mrb[11].mxu0 }
 0x16d   : > { %v3264_v58 = vpop.f32.mrb[10].mxu1  ;;  %v1463_v36 = vmul.f32 %v771_v11, %v771_v11  ;;  %v1581_v17 = vsel %vm412_vm0, %v1469_v9, 0.0 }
 0x16e   : > { %1531 = vadd.xlane.f32.xlu1 %v1530_v19  ;;  %v900_v32 = vpop.f32.mrb[11].mxu1  ;;  %v1472_v51 = vmul.f32 %v3264_v58, %v3264_v58  ;;  %v1566_v25 = vsel %vm412_vm0, %v1464_v24, 0.0 }
 0x16f   : > { %1585 = vadd.xlane.f32.xlu0 %v1584_v12  ;;  %v3239_v34 = vpop.f32.mrb[12].mxu0  ;;  %v1471_v31 = vmul.f32 %v900_v32, %v900_v32  ;;  %v1563_v2 = vsel %vm412_vm0, %v1463_v36, 0.0 }
 0x170   : > { %v781_v4 = vpop.f32.mrb[13].mxu0  ;;  %v1466_v43 = vmul.f32 %v3239_v34, %v3239_v34  ;;  %v1590_v16 = vsel %vm412_vm0, %v1472_v51, 0.0 }
 0x171   : > { %v3267_v57 = vpop.f32.mrb[12].mxu1  ;;  %v1465_v19 = vmul.f32 %v781_v4, %v781_v4  ;;  %v1587_v20 = vsel %vm412_vm0, %v1471_v31, 0.0 }
 0x172   : > { %1528 = vadd.xlane.f32.xlu1 %v1527_v29  ;;  %v910_v22 = vpop.f32.mrb[13].mxu1  ;;  %v1474_v44 = vmul.f32 %v3267_v57, %v3267_v57  ;;  %v1572_v8 = vsel %vm412_vm0, %v1466_v43, 0.0 }
 0x173   : > { %1567 = vadd.xlane.f32.xlu0 %v1566_v25  ;;  %v1473_v24 = vmul.f32 %v910_v22, %v910_v22  ;;  %v1569_v12 = vsel %vm412_vm0, %v1465_v19, 0.0 }
 0x174   : > { %v3242_v30 = vpop.f32.mrb[14].mxu0  ;;  %v1596_v52 = vsel %vm412_vm0, %v1474_v44, 0.0 }
 0x175   : > { %v791_v18 = vpop.f32.mrb[15].mxu0  ;;  %v1468_v48 = vmul.f32 %v3242_v30, %v3242_v30  ;;  %v1593_v25 = vsel %vm412_vm0, %v1473_v24, 0.0 }
 0x176   : > { %1552 = vadd.xlane.f32.xlu1 %v1551_v45  ;;  %v3270_v21 = vpop.f32.mrb[14].mxu1  ;;  %v1467_v51 = vmul.f32 %v791_v18, %v791_v18 }
 0x177   : > { %1591 = vadd.xlane.f32.xlu0 %v1590_v16  ;;  %v920_v50 = vpop.f32.mrb[15].mxu1  ;;  %v1476_v55 = vmul.f32 %v3270_v21, %v3270_v21  ;;  %v1578_v61 = vsel %vm412_vm0, %v1468_v48, 0.0 }
 0x178   : > { %v1475_v16 = vmul.f32 %v920_v50, %v920_v50  ;;  %v1575_v30 = vsel %vm412_vm0, %v1467_v51, 0.0  ;;  %v4816_v50 = vpop.xlane.xlu1 %2306 }
 0x179   : > { %v1602_v54 = vsel %vm412_vm0, %v1476_v55, 0.0 }
 0x17a   : > { %1558 = vadd.xlane.f32.xlu1 %v1557_v38  ;;  %v1599_v9 = vsel %vm412_vm0, %v1475_v16, 0.0 }
 0x17b   : > { %1573 = vadd.xlane.f32.xlu0 %v1572_v8 }
 0x17e   : > { %1582 = vadd.xlane.f32.xlu1 %v1581_v17 }
 0x17f   : > { %1597 = vadd.xlane.f32.xlu0 %v1596_v52 }
 0x182   : > { %1564 = vadd.xlane.f32.xlu1 %v1563_v2 }
 0x183   : > { %1579 = vadd.xlane.f32.xlu0 %v1578_v61 }
 0x186   : > { %1588 = vadd.xlane.f32.xlu1 %v1587_v20 }
 0x187   : > { %v3289_v11 = vpop.f32.mrb[16].mxu0  ;;  %1603 = vadd.xlane.f32.xlu0 %v1602_v54 }
 0x188   : > { %v1478_v39 = vmul.f32 %v3289_v11, %v3289_v11  ;;  %v1019_v58 = vpop.f32.mrb[17].mxu0 }
 0x189   : > { %v3317_v32 = vpop.f32.mrb[16].mxu1  ;;  %v1477_v24 = vmul.f32 %v1019_v58, %v1019_v58 }
 0x18a   : > { %1570 = vadd.xlane.f32.xlu1 %v1569_v12  ;;  %v1148_v41 = vpop.f32.mrb[17].mxu1  ;;  %v1608_v34 = vsel %vm412_vm0, %v1478_v39, 0.0  ;;  %v1486_v8 = vmul.f32 %v3317_v32, %v3317_v32  ;;  %v4820_v12 = vpop.xlane.xlu1 %2348 }
 0x18b   : > { %v1485_v4 = vmul.f32 %v1148_v41, %v1148_v41  ;;  %1609 = vadd.xlane.f32.xlu0 %v1608_v34  ;;  %v3292_v29 = vpop.f32.mrb[18].mxu0  ;;  %v1605_v41 = vsel %vm412_vm0, %v1477_v24, 0.0 }
 0x18c   : > { %v1480_v57 = vmul.f32 %v3292_v29, %v3292_v29  ;;  %v1029_v37 = vpop.f32.mrb[19].mxu0  ;;  %v1632_v55 = vsel %vm412_vm0, %v1486_v8, 0.0  ;;  %v4833_v8 = vpop.xlane.xlu0 %2309 }
 0x18d   : > { %v1629_v22 = vsel %vm412_vm0, %v1485_v4, 0.0  ;;  %v3320_v45 = vpop.f32.mrb[18].mxu1  ;;  %v1479_v11 = vmul.f32 %v1029_v37, %v1029_v37 }
 0x18e   : > { %1594 = vadd.xlane.f32.xlu1 %v1593_v25  ;;  %v1158_v43 = vpop.f32.mrb[19].mxu1  ;;  %v1488_v38 = vmul.f32 %v3320_v45, %v3320_v45  ;;  %v1614_v18 = vsel %vm412_vm0, %v1480_v57, 0.0  ;;  %v4826_v29 = vpop.xlane.xlu1 %2288 }
 0x18f   : > { %1630 = vadd.xlane.f32.xlu0 %v1629_v22  ;;  %v3295_v21 = vpop.f32.mrb[20].mxu0  ;;  %v1487_v34 = vmul.f32 %v1158_v43, %v1158_v43  ;;  %v1611_v51 = vsel %vm412_vm0, %v1479_v11, 0.0 }
 0x190   : > { %v1039_v44 = vpop.f32.mrb[21].mxu0  ;;  %v1482_v48 = vmul.f32 %v3295_v21, %v3295_v21  ;;  %v1638_v52 = vsel %vm412_vm0, %v1488_v38, 0.0 }
 0x191   : > { %v1481_v58 = vmul.f32 %v1039_v44, %v1039_v44  ;;  %v1635_v57 = vsel %vm412_vm0, %v1487_v34, 0.0 }
 0x192   : > { %1576 = vadd.xlane.f32.xlu1 %v1575_v30  ;;  %v1620_v20 = vsel %vm412_vm0, %v1482_v48, 0.0  ;;  %v4830_v22 = vpop.xlane.xlu1 %2330 }
 0x193   : > { %1615 = vadd.xlane.f32.xlu0 %v1614_v18  ;;  %v3323_v36 = vpop.f32.mrb[20].mxu1  ;;  %v1617_v43 = vsel %vm412_vm0, %v1481_v58, 0.0 }
 0x194   : > { %v1168_v17 = vpop.f32.mrb[21].mxu1  ;;  %v3298_v31 = vpop.f32.mrb[22].mxu0  ;;  %v1490_v19 = vmul.f32 %v3323_v36, %v3323_v36 }
 0x195   : > { %v1049_v2 = vpop.f32.mrb[23].mxu0  ;;  %v1484_v39 = vmul.f32 %v3298_v31, %v3298_v31  ;;  %v1489_v45 = vmul.f32 %v1168_v17, %v1168_v17 }
 0x196   : > { %1600 = vadd.xlane.f32.xlu1 %v1599_v9  ;;  %v1644_v32 = vsel %vm412_vm0, %v1490_v19, 0.0  ;;  %v1483_v44 = vmul.f32 %v1049_v2, %v1049_v2  ;;  %v4837_v31 = vpop.xlane.xlu1 %2312 }
 0x197   : > { %1639 = vadd.xlane.f32.xlu0 %v1638_v52  ;;  %v3326_v61 = vpop.f32.mrb[22].mxu1  ;;  %v1626_v4 = vsel %vm412_vm0, %v1484_v39, 0.0  ;;  %v1641_v9 = vsel %vm412_vm0, %v1489_v45, 0.0  ;;  %v2588_v45 = vrot.slane %v4613_v13, %v4629_v26  ;;  %v2631_v13 = vrot.slane %v4642_v28, %v4625_v5 }
 0x198   : > { %v1178_v54 = vpop.f32.mrb[23].mxu1  ;;  %v1492_v25 = vmul.f32 %v3326_v61, %v3326_v61  ;;  %v1623_v11 = vsel %vm412_vm0, %v1483_v44, 0.0  ;;  %v2636_v28 = vrot.slane %v4682_v0, %v4635_v7  ;;  %v2709_v0 = vrot.slane %v4721_v15, %v4625_v5 }
 0x199   : > { %v1491_v24 = vmul.f32 %v1178_v54, %v1178_v54 }
 0x19a   : > { %1633 = vadd.xlane.f32.xlu1 %v1632_v55  ;;  %v1650_v37 = vsel %vm412_vm0, %v1492_v25, 0.0 }
 0x19b   : > { %1621 = vadd.xlane.f32.xlu0 %v1620_v20  ;;  %v1647_v54 = vsel %vm412_vm0, %v1491_v24, 0.0 }
 0x19e   : > { %1606 = vadd.xlane.f32.xlu1 %v1605_v41 }
 0x19f   : > { %1645 = vadd.xlane.f32.xlu0 %v1644_v32  ;;  %v4843_v32 = vpop.xlane.xlu0 %2351 }
 0x1a2   : > { %1612 = vadd.xlane.f32.xlu1 %v1611_v51 }
 0x1a3   : > { %1627 = vadd.xlane.f32.xlu0 %v1626_v4  ;;  %v4848_v4 = vpop.xlane.xlu1 %2354 }
 0x1a6   : > { %1636 = vadd.xlane.f32.xlu1 %v1635_v57 }
 0x1a7   : > { %v3345_v16 = vpop.f32.mrb[24].mxu0  ;;  %1651 = vadd.xlane.f32.xlu0 %v1650_v37 }
 0x1a8   : > { %v1277_v30 = vpop.f32.mrb[25].mxu0  ;;  %v1494_v58 = vmul.f32 %v3345_v16, %v3345_v16  ;;  %v4860_v16 = vpop.xlane.xlu0 %2291 }
 0x1a9   : > { %v1493_v21 = vmul.f32 %v1277_v30, %v1277_v30  ;;  %v3373_v38 = vpop.f32.mrb[24].mxu1 }
 0x1aa   : > { %1618 = vadd.xlane.f32.xlu1 %v1617_v43  ;;  %v1406_v18 = vpop.f32.mrb[25].mxu1  ;;  %v2592_v43 = vrot.slane %v4605_v3, %v4625_v5  ;;  %v2627_v3 = vrot.slane %v4615_v33, %v4629_v26  ;;  %v2602_v33 = vrot.slane %v4656_v47, %v4647_v40 }
 0x1ab   : > { %v1501_v36 = vmul.f32 %v1406_v18, %v1406_v18  ;;  %v1653_v48 = vsel %vm412_vm0, %v1493_v21, 0.0  ;;  %v3348_v52 = vpop.f32.mrb[26].mxu0 }
 0x1ac   : > { %1654 = vadd.xlane.f32.xlu0 %v1653_v48  ;;  %v1287_v17 = vpop.f32.mrb[27].mxu0  ;;  %v1496_v55 = vmul.f32 %v3348_v52, %v3348_v52  ;;  %v2597_v48 = vrot.slane %v4631_v62, %v4635_v7  ;;  %v2593_v52 = vsel %vm1774_vm4, %v2592_v43, %v2588_v45  ;;  %v2666_v62 = vrot.slane %v4677_v60, %v4629_v26 }
 0x1ad   : > { %v1677_v61 = vsel %vm412_vm0, %v1501_v36, 0.0  ;;  %v3376_v19 = vpop.f32.mrb[26].mxu1  ;;  %v1656_v36 = vsel %vm412_vm0, %v1494_v58, 0.0  ;;  %v1495_v24 = vmul.f32 %v1287_v17, %v1287_v17  ;;  %v2675_v60 = vrot.slane %v4713_v63, %v4635_v7 }
 0x1ae   : > { %1642 = vadd.xlane.f32.xlu1 %v1641_v9  ;;  %v1416_v20 = vpop.f32.mrb[27].mxu1  ;;  %v1504_v41 = vmul.f32 %v3376_v19, %v3376_v19  ;;  %v1662_v34 = vsel %vm412_vm0, %v1496_v55, 0.0  ;;  %v1502_v9 = vmul.f32 %v3373_v38, %v3373_v38  ;;  %v4870_v55 = vpop.xlane.xlu1 %2315  ;;  %v2670_v38 = vrot.slane %v4692_v56, %v4625_v5 }
 0x1af   : > { %v3351_v2 = vpop.f32.mrb[28].mxu0  ;;  %v2705_v56 = vrot.slane %v4754_v10, %v4629_v26  ;;  %v2607_v58 = vrot.slane %v4707_v27, %v4654_v6  ;;  %v1503_v43 = vmul.f32 %v1416_v20, %v1416_v20  ;;  %v1659_v15 = vsel %vm412_vm0, %v1495_v24, 0.0 }
 0x1b0   : > { %1678 = vadd.xlane.f32.xlu0 %v1677_v61  ;;  %v4841_v39 = vpop.f32.mrb[29].mxu0  ;;  %v1498_v30 = vmul.f32 %v3351_v2, %v3351_v2  ;;  %v1686_v21 = vsel %vm412_vm0, %v1504_v41, 0.0  ;;  %v2598_v2 = vsel %vm1781_vm5, %v2597_v48, %v2593_v52  ;;  %v2632_v41 = vsel %vm1774_vm4, %v2631_v13, %v2627_v3 }
 0x1b1   : > { %v3379_v51 = vpop.f32.mrb[28].mxu1  ;;  %v2671_v17 = vsel %vm1774_vm4, %v2670_v38, %v2666_v62  ;;  %v2637_v10 = vsel %vm1781_vm5, %v2636_v28, %v2632_v41  ;;  %v2603_v63 = vsel %vm1788_vm6, %v2602_v33, %v2598_v2  ;;  %v2612_v48 = vrot.slane %v4752_v53, %v4665_v49 }
 0x1b2   : > { %1624 = vadd.xlane.f32.xlu1 %v1623_v11  ;;  %v4846_v25 = vpop.f32.mrb[29].mxu1  ;;  %v1506_v61 = vmul.f32 %v3379_v51, %v3379_v51  ;;  %v1668_v19 = vsel %vm412_vm0, %v1498_v30, 0.0  ;;  %v1680_v11 = vsel %vm412_vm0, %v1502_v9, 0.0  ;;  %v2358_v45 = vpop.xlane.xlu1 %2357  ;;  %v2714_v30 = vrot.slane %v4820_v12, %v4635_v7 }
 0x1b3   : > { %v3354_v57 = vpop.f32.mrb[30].mxu0  ;;  %v2676_v27 = vsel %vm1781_vm5, %v2675_v60, %v2671_v17  ;;  %v2685_v12 = vrot.slane %v4830_v22, %v4654_v6  ;;  %v2719_v13 = vrot.slane %v4843_v32, %v4647_v40  ;;  %v1497_v3 = vmul.f32 %v4841_v39, %v4841_v39 }
 0x1b4   : > { %1663 = vadd.xlane.f32.xlu0 %v1662_v34  ;;  %v4851_v37 = vpop.f32.mrb[31].mxu0  ;;  %v2334_v34 = vpop.xlane.xlu0 %2333  ;;  %v1500_v51 = vmul.f32 %v3354_v57, %v3354_v57  ;;  %v1692_v47 = vsel %vm412_vm0, %v1506_v61, 0.0  ;;  %v2680_v57 = vrot.slane %v4763_v23, %v4647_v40  ;;  %v2646_v23 = vrot.slane %v4816_v50, %v4654_v6 }
 0x1b5   : > { %v3382_v18 = vpop.f32.mrb[30].mxu1  ;;  %v1683_v52 = vsel %vm412_vm0, %v1503_v43, 0.0  ;;  %v2617_v50 = vrot.slane %v4826_v29, %v4675_v59  ;;  %v2651_v22 = vrot.slane %v4833_v8, %v4665_v49  ;;  %v2724_v62 = vrot.slane %v4848_v4, %v4654_v6 }
 0x1b6   : > { %1648 = vadd.xlane.f32.xlu1 %v1647_v54  ;;  %v4858_v44 = vpop.f32.mrb[31].mxu1  ;;  %v2641_v54 = vrot.slane %v4734_v46, %v4647_v40  ;;  %v2710_v46 = vsel %vm1774_vm4, %v2709_v0, %v2705_v56  ;;  %v1674_v9 = vsel %vm412_vm0, %v1500_v51, 0.0  ;;  %v2681_v61 = vsel %vm1788_vm6, %v2680_v57, %v2676_v27 }
 0x1b7   : > { %v2715_v53 = vsel %vm1781_vm5, %v2714_v30, %v2710_v46  ;;  %v2690_v28 = vrot.slane %v2334_v34, %v4665_v49  ;;  %v2686_v33 = vsel %vm1795_vm7, %v2685_v12, %v2681_v61  ;;  %v1505_v8 = vmul.f32 %v4846_v25, %v4846_v25 }
 0x1b8   : > { %1687 = vadd.xlane.f32.xlu0 %v1686_v21  ;;  %v1508_v21 = vmul.f32 %v3382_v18, %v3382_v18  ;;  %v2642_v20 = vsel %vm1788_vm6, %v2641_v54, %v2637_v10  ;;  %v2337_v18 = vpop.xlane.xlu0 %2336  ;;  %v2720_v29 = vsel %vm1788_vm6, %v2719_v13, %v2715_v53  ;;  %v1665_v24 = vsel %vm412_vm0, %v1497_v3, 0.0 }
 0x1b9   : > { %v2647_v39 = vsel %vm1795_vm7, %v2646_v23, %v2642_v20  ;;  %v2622_v2 = vrot.slane %v4860_v16, %v4686_v35  ;;  %v2729_v56 = vrot.slane %v2358_v45, %v4665_v49  ;;  %v2695_v60 = vrot.slane %v2337_v18, %v4675_v59 }
 0x1ba   : > { %1657 = vadd.xlane.f32.xlu1 %v1656_v36  ;;  %v2608_v36 = vsel %vm1795_vm7, %v2607_v58, %v2603_v63  ;;  %v1698_v32 = vsel %vm412_vm0, %v1508_v21, 0.0  ;;  %v2652_v41 = vsel %vm1802_vm8, %v2651_v22, %v2647_v39  ;;  %v2725_v25 = vsel %vm1795_vm7, %v2724_v62, %v2720_v29 }
 0x1bb   : > { %v2613_v38 = vsel %vm1802_vm8, %v2612_v48, %v2608_v36  ;;  %v2691_v34 = vsel %vm1802_vm8, %v2690_v28, %v2686_v33  ;;  %v1499_v51 = vmul.f32 %v4851_v37, %v4851_v37  ;;  %v2730_v63 = vsel %vm1802_vm8, %v2729_v56, %v2725_v25 }
 0x1bc   : > { %1669 = vadd.xlane.f32.xlu0 %v1668_v19  ;;  %v2361_v19 = vpop.xlane.xlu1 %2360  ;;  %v2618_v4 = vsel %vm1809_vm9, %v2617_v50, %v2613_v38  ;;  %v2340_v0 = vpop.xlane.xlu0 %2339  ;;  %v2696_v45 = vsel %vm1809_vm9, %v2695_v60, %v2691_v34 }
 0x1bd   : > { %v2623_v58 = vsel %vm1816_vm10, %v2622_v2, %v2618_v4  ;;  %v2734_v54 = vrot.slane %v2361_v19, %v4675_v59  ;;  %v2700_v10 = vrot.slane %v2340_v0, %v4686_v35  ;;  %v1671_v57 = vsel %vm412_vm0, %v1499_v51, 0.0 }
 0x1be   : > { %1681 = vadd.xlane.f32.xlu1 %v1680_v11  ;;  %v2656_v11 = vrot.slane %v4837_v31, %v4675_v59  ;;  %v2661_v31 = vrot.slane %v4870_v55, %v4686_v35  ;;  %v2744_v37 = vsel %vm2097_vm14, %v2623_v58, %v4787_v1 }
 0x1bf   : > { %v2735_v30 = vsel %vm1809_vm9, %v2734_v54, %v2730_v63  ;;  %v2701_v27 = vsel %vm1816_vm10, %v2700_v10, %v2696_v45 }
 0x1c0   : > { %1693 = vadd.xlane.f32.xlu0 %v1692_v47  ;;  %v2364_v16 = vpop.xlane.xlu1 %2363  ;;  %v1689_v47 = vsel %vm412_vm0, %v1505_v8, 0.0  ;;  %v2657_v17 = vsel %vm1809_vm9, %v2656_v11, %v2652_v41 }
 0x1c1   : > { %v2739_v55 = vrot.slane %v2364_v16, %v4686_v35  ;;  %v2662_v43 = vsel %vm1816_vm10, %v2661_v31, %v2657_v17 }
 0x1c2   : > { %1660 = vadd.xlane.f32.xlu1 %v1659_v15  ;;  %v1507_v15 = vmul.f32 %v4858_v44, %v4858_v44  ;;  %v2745_v46 = vsel %vm2099_vm15, %v2662_v43, %v2744_v37 }
 0x1c3   : > { %v2740_v1 = vsel %vm1816_vm10, %v2739_v55, %v2735_v30 }
 0x1c4   : > { %1675 = vadd.xlane.f32.xlu0 %v1674_v9  ;;  %v1695_v21 = vsel %vm412_vm0, %v1507_v15, 0.0  ;;  %v2746_v9 = vsel %vm2101_vm1, %v2701_v27, %v2745_v46 }
 0x1c5   : > { %v2747_v44 = vsel %vm2103_vm2, %v2740_v1, %v2746_v9 }
 0x1c6   : > { %1684 = vadd.xlane.f32.xlu1 %v1683_v52  ;;  %v2749_v20 = vsel %vm412_vm0, %v2747_v44, 0.0 }
 0x1c8   : > { %1699 = vadd.xlane.f32.xlu0 %v1698_v32 }
 0x1ca   : > { %1666 = vadd.xlane.f32.xlu1 %v1665_v24 }
 0x1ce   : > { %1690 = vadd.xlane.f32.xlu1 %v1689_v47 }
 0x1d2   : > { %1672 = vadd.xlane.f32.xlu1 %v1671_v57 }
 0x1d6   : > { %1696 = vadd.xlane.f32.xlu1 %v1695_v21 }
 0x1d7   : > { %v1514_v36 = vpop.xlane.xlu1 %1513 }
 0x1d8   : > { %v1538_v23 = vpop.xlane.xlu0 %1537  ;;  %v1773_v12 = vrot.slane %v1514_v36, %v4625_v5 }
 0x1d9   : > { %v1825_v3 = vrot.slane %v1538_v23, %v4625_v5 }
 0x1da   : > { %2750 = vadd.xlane.f32.xlu1 %v2749_v20 }
 0x1db   : > { %v1511_v48 = vpop.xlane.xlu1 %1510 }
 0x1dc   : > { %v1768_v13 = vrot.slane %v1511_v48, %v4629_v26  ;;  %v1544_v39 = vpop.xlane.xlu0 %1543 }
 0x1dd   : > { %v1835_v29 = vrot.slane %v1544_v39, %v4647_v40 }
 0x1de   : > { %v1775_v18 = vsel %vm1774_vm4, %v1773_v12, %v1768_v13 }
 0x1df   : > { %v1535_v52 = vpop.xlane.xlu1 %1534 }
 0x1e0   : > { %v1821_v61 = vrot.slane %v1535_v52, %v4629_v26  ;;  %v1550_v24 = vpop.xlane.xlu0 %1549 }
 0x1e1   : > { %v1845_v51 = vrot.slane %v1550_v24, %v4665_v49 }
 0x1e2   : > { %v1826_v53 = vsel %vm1774_vm4, %v1825_v3, %v1821_v61 }
 0x1e3   : > { %v1520_v50 = vpop.xlane.xlu1 %1519 }
 0x1e4   : > { %v1787_v32 = vrot.slane %v1520_v50, %v4647_v40 }
 0x1e5   : > { %v1556_v4 = vpop.xlane.xlu0 %1555 }
 0x1e6   : > { %v1855_v27 = vrot.slane %v1556_v4, %v4686_v35 }
 0x1e7   : > { %v1517_v22 = vpop.xlane.xlu1 %1516 }
 0x1e8   : > { %v1780_v19 = vrot.slane %v1517_v22, %v4635_v7 }
 0x1ea   : > { %v1782_v38 = vsel %vm1781_vm5, %v1780_v19, %v1775_v18 }
 0x1eb   : > { %v1541_v62 = vpop.xlane.xlu1 %1540  ;;  %v1789_v28 = vsel %vm1788_vm6, %v1787_v32, %v1782_v38 }
 0x1ec   : > { %v1830_v33 = vrot.slane %v1541_v62, %v4635_v7 }
 0x1ee   : > { %v1831_v8 = vsel %vm1781_vm5, %v1830_v33, %v1826_v53 }
 0x1ef   : > { %v1526_v11 = vpop.xlane.xlu1 %1525  ;;  %v1836_v2 = vsel %vm1788_vm6, %v1835_v29, %v1831_v8 }
 0x1f0   : > { %v1801_v60 = vrot.slane %v1526_v11, %v4665_v49 }
 0x1f3   : > { %v1523_v41 = vpop.xlane.xlu1 %1522 }
 0x1f4   : > { %v1794_v56 = vrot.slane %v1523_v41, %v4654_v6 }
 0x1f6   : > { %v1796_v0 = vsel %vm1795_vm7, %v1794_v56, %v1789_v28 }
 0x1f7   : > { %v1547_v25 = vpop.xlane.xlu1 %1546  ;;  %v1803_v34 = vsel %vm1802_vm8, %v1801_v60, %v1796_v0 }
 0x1f8   : > { %v1840_v31 = vrot.slane %v1547_v25, %v4654_v6  ;;  %v1562_v16 = vpop.xlane.xlu0 %1561 }
 0x1f9   : > { %v1864_v21 = vrot.slane %v1562_v16, %v4625_v5 }
 0x1fa   : > { %v1841_v47 = vsel %vm1795_vm7, %v1840_v31, %v1836_v2 }
 0x1fb   : > { %v1532_v17 = vpop.xlane.xlu1 %1531  ;;  %v1846_v58 = vsel %vm1802_vm8, %v1845_v51, %v1841_v47 }
 0x1fc   : > { %v1586_v54 = vpop.xlane.xlu0 %1585  ;;  %v1815_v55 = vrot.slane %v1532_v17, %v4686_v35 }
 0x1fd   : > { %v1903_v12 = vrot.slane %v1586_v54, %v4625_v5 }
 0x1ff   : > { %v1529_v10 = vpop.xlane.xlu1 %1528 }
 0x200   : > { %v1808_v63 = vrot.slane %v1529_v10, %v4675_v59  ;;  %v1568_v45 = vpop.xlane.xlu0 %1567 }
 0x201   : > { %v1874_v50 = vrot.slane %v1568_v45, %v4647_v40 }
 0x202   : > { %v1810_v37 = vsel %vm1809_vm9, %v1808_v63, %v1803_v34 }
 0x203   : > { %v1817_v43 = vsel %vm1816_vm10, %v1815_v55, %v1810_v37  ;;  %v1553_v15 = vpop.xlane.xlu1 %1552 }
 0x204   : > { %v1850_v57 = vrot.slane %v1553_v15, %v4675_v59  ;;  %v1592_v30 = vpop.xlane.xlu0 %1591 }
 0x205   : > { %v1913_v62 = vrot.slane %v1592_v30, %v4647_v40 }
 0x206   : > { %v1851_v46 = vsel %vm1809_vm9, %v1850_v57, %v1846_v58 }
 0x207   : > { %v1856_v1 = vsel %vm1816_vm10, %v1855_v27, %v1851_v46  ;;  %v1559_v9 = vpop.xlane.xlu1 %1558 }
 0x208   : > { %v2092_v44 = vsel %vm2091_vm11, %v1856_v1, %v1817_v43  ;;  %v1860_v36 = vrot.slane %v1559_v9, %v4629_v26  ;;  %v1574_v20 = vpop.xlane.xlu0 %1573 }
 0x209   : > { %v1884_v11 = vrot.slane %v1574_v20, %v4665_v49 }
 0x20a   : > { %v1865_v48 = vsel %vm1774_vm4, %v1864_v21, %v1860_v36 }
 0x20b   : > { %v1583_v23 = vpop.xlane.xlu1 %1582 }
 0x20c   : > { %v1899_v13 = vrot.slane %v1583_v23, %v4629_v26  ;;  %v1598_v18 = vpop.xlane.xlu0 %1597 }
 0x20d   : > { %v1923_v0 = vrot.slane %v1598_v18, %v4665_v49 }
 0x20e   : > { %v1904_v3 = vsel %vm1774_vm4, %v1903_v12, %v1899_v13 }
 0x20f   : > { %v1565_v52 = vpop.xlane.xlu1 %1564 }
 0x210   : > { %v1869_v61 = vrot.slane %v1565_v52, %v4635_v7  ;;  %v1580_v53 = vpop.xlane.xlu0 %1579 }
 0x211   : > { %v1894_v47 = vrot.slane %v1580_v53, %v4686_v35 }
 0x212   : > { %v1870_v22 = vsel %vm1781_vm5, %v1869_v61, %v1865_v48 }
 0x213   : > { %v1589_v19 = vpop.xlane.xlu1 %1588  ;;  %v1875_v32 = vsel %vm1788_vm6, %v1874_v50, %v1870_v22 }
 0x214   : > { %v1908_v38 = vrot.slane %v1589_v19, %v4635_v7  ;;  %v1604_v39 = vpop.xlane.xlu0 %1603 }
 0x215   : > { %v1933_v55 = vrot.slane %v1604_v39, %v4686_v35 }
 0x216   : > { %v1909_v28 = vsel %vm1781_vm5, %v1908_v38, %v1904_v3 }
 0x217   : > { %v1571_v33 = vpop.xlane.xlu1 %1570  ;;  %v1914_v29 = vsel %vm1788_vm6, %v1913_v62, %v1909_v28 }
 0x218   : > { %v1879_v8 = vrot.slane %v1571_v33, %v4654_v6  ;;  %v1610_v24 = vpop.xlane.xlu0 %1609 }
 0x219   : > { %v1942_v62 = vrot.slane %v1610_v24, %v4625_v5 }
 0x21a   : > { %v1880_v2 = vsel %vm1795_vm7, %v1879_v8, %v1875_v32 }
 0x21b   : > { %v1595_v4 = vpop.xlane.xlu1 %1594  ;;  %v1885_v41 = vsel %vm1802_vm8, %v1884_v11, %v1880_v2 }
 0x21c   : > { %v1918_v56 = vrot.slane %v1595_v4, %v4654_v6  ;;  %v1631_v60 = vpop.xlane.xlu0 %1630 }
 0x21d   : > { %v1977_v32 = vrot.slane %v1631_v60, %v4629_v26 }
 0x21e   : > { %v1919_v25 = vsel %vm1795_vm7, %v1918_v56, %v1914_v29 }
 0x21f   : > { %v1577_v34 = vpop.xlane.xlu1 %1576  ;;  %v1924_v31 = vsel %vm1802_vm8, %v1923_v0, %v1919_v25 }
 0x220   : > { %v1889_v16 = vrot.slane %v1577_v34, %v4675_v59  ;;  %v1616_v51 = vpop.xlane.xlu0 %1615 }
 0x221   : > { %v1952_v24 = vrot.slane %v1616_v51, %v4647_v40 }
 0x222   : > { %v1890_v17 = vsel %vm1809_vm9, %v1889_v16, %v1885_v41 }
 0x223   : > { %v1895_v58 = vsel %vm1816_vm10, %v1894_v47, %v1890_v17  ;;  %v1601_v54 = vpop.xlane.xlu1 %1600 }
 0x224   : > { %v2094_v10 = vsel %vm2093_vm12, %v1895_v58, %v2092_v44  ;;  %v1928_v63 = vrot.slane %v1601_v54, %v4675_v59  ;;  %v1640_v45 = vpop.xlane.xlu0 %1639 }
 0x225   : > { %v1991_v34 = vrot.slane %v1640_v45, %v4647_v40 }
 0x226   : > { %v1929_v37 = vsel %vm1809_vm9, %v1928_v63, %v1924_v31 }
 0x227   : > { %v1934_v43 = vsel %vm1816_vm10, %v1933_v55, %v1929_v37  ;;  %v1634_v15 = vpop.xlane.xlu1 %1633 }
 0x228   : > { %v5035_v57 = vsel %vm2095_vm13, %v1934_v43, %v2094_v10  ;;  %v1622_v30 = vpop.xlane.xlu0 %1621  ;;  %v1981_v19 = vrot.slane %v1634_v15, %v4625_v5 }
 0x22a   : > { %v1982_v4 = vsel %vm1774_vm4, %v1981_v19, %v1977_v32 }
 0x22b   : > { %v1607_v27 = vpop.xlane.xlu1 %1606 }
 0x22c   : > { %v5037_v46 = vpop.xlane.xlu0 %1645  ;;  %v1938_v22 = vrot.slane %v1607_v27, %v4629_v26 }
 0x22e   : > { %v1943_v8 = vsel %vm1774_vm4, %v1942_v62, %v1938_v22 }
 0x22f   : > { %v1613_v21 = vpop.xlane.xlu1 %1612 }
 0x230   : > { %v5039_v1 = vpop.xlane.xlu0 %1627  ;;  %v1947_v38 = vrot.slane %v1613_v21, %v4635_v7 }
 0x232   : > { %v1948_v41 = vsel %vm1781_vm5, %v1947_v38, %v1943_v8 }
 0x233   : > { %v1637_v9 = vpop.xlane.xlu1 %1636  ;;  %v1953_v17 = vsel %vm1788_vm6, %v1952_v24, %v1948_v41  ;;  %v391_v24 = vstv %s2893_s22 }
 0x234   : > { %v5041_v44 = vpop.xlane.xlu0 %1651  ;;  %v1986_v28 = vrot.slane %v1637_v9, %v4635_v7 }
 0x236   : > { %v1987_v0 = vsel %vm1781_vm5, %v1986_v28, %v1982_v4 }
 0x237   : > { %v1619_v36 = vpop.xlane.xlu1 %1618  ;;  %v1992_v63 = vsel %vm1788_vm6, %v1991_v34, %v1987_v0  ;;  %v392_v0 = vadd.s32 %v391_v24, %v4618_v14 }
 0x238   : > { %v1957_v56 = vrot.slane %v1619_v36, %v4654_v6 }
 0x239   : > { %v1655_v20 = vpop.xlane.xlu0 %1654  ;;  %vm393_vm3 = vcmp.lt.s32.totalorder %v392_v0, 10 }
 0x23a   : > { %v2016_v33 = vrot.slane %v1655_v20, %v4629_v26  ;;  %v1958_v10 = vsel %vm1795_vm7, %v1957_v56, %v1953_v17  ;;  %v405_v34 = vsel %vm393_vm3, %v4774_v42, 0.0 }
 0x23b   : > { %v1643_v48 = vpop.xlane.xlu1 %1642 }
 0x23c   : > { %v1996_v25 = vrot.slane %v1643_v48, %v4654_v6 }
 0x23d   : > { %v1679_v23 = vpop.xlane.xlu0 %1678 }
 0x23e   : > { %v2055_v16 = vrot.slane %v1679_v23, %v4629_v26  ;;  %v1962_v26 = vrot.slane %v1622_v30, %v4665_v49 }
 0x23f   : > { %v1625_v12 = vpop.xlane.xlu1 %1624 }
 0x240   : > { %v1967_v45 = vrot.slane %v1625_v12, %v4675_v59  ;;  %v1963_v9 = vsel %vm1802_vm8, %v1962_v26, %v1958_v10 }
 0x241   : > { %v1664_v18 = vpop.xlane.xlu0 %1663 }
 0x242   : > { %v2030_v55 = vrot.slane %v1664_v18, %v4647_v40  ;;  %v1968_v48 = vsel %vm1809_vm9, %v1967_v45, %v1963_v9  ;;  %v1972_v18 = vrot.slane %v5039_v1, %v4686_v35 }
 0x243   : > { %v1649_v13 = vpop.xlane.xlu1 %1648 }
 0x244   : > { %v2006_v43 = vrot.slane %v1649_v13, %v4675_v59  ;;  %v1973_v19 = vsel %vm1816_vm10, %v1972_v18, %v1968_v48 }
 0x245   : > { %v1688_v52 = vpop.xlane.xlu0 %1687 }
 0x246   : > { %v2069_v12 = vrot.slane %v1688_v52, %v4647_v40 }
 0x247   : > { %v1658_v3 = vpop.xlane.xlu1 %1657 }
 0x248   : > { %v2020_v29 = vrot.slane %v1658_v3, %v4625_v5 }
 0x249   : > { %v1670_v50 = vpop.xlane.xlu0 %1669 }
 0x24a   : > { %v2021_v31 = vsel %vm1774_vm4, %v2020_v29, %v2016_v33  ;;  %v2098_v29 = vsel %vm2097_vm14, %v1973_v19, %v5035_v57 }
 0x24b   : > { %v1682_v61 = vpop.xlane.xlu1 %1681 }
 0x24c   : > { %v2059_v47 = vrot.slane %v1682_v61, %v4625_v5  ;;  %v1997_v5 = vsel %vm1795_vm7, %v1996_v25, %v1992_v63 }
 0x24d   : > { %v1694_v2 = vpop.xlane.xlu0 %1693 }
 0x24e   : > { %v2060_v27 = vsel %vm1774_vm4, %v2059_v47, %v2055_v16  ;;  %v2079_v38 = vrot.slane %v1694_v2, %v4665_v49 }
 0x24f   : > { %v1661_v53 = vpop.xlane.xlu1 %1660 }
 0x250   : > { %v2025_v11 = vrot.slane %v1661_v53, %v4635_v7  ;;  %v2011_v53 = vrot.slane %v5041_v44, %v4686_v35 }
 0x251   : > { %v1676_v15 = vpop.xlane.xlu0 %1675 }
 0x252   : > { %v2026_v58 = vsel %vm1781_vm5, %v2025_v11, %v2021_v31  ;;  %v2050_v52 = vrot.slane %v1676_v15, %v4686_v35  ;;  %v406_v31 = vrot.slane %v405_v34, 4 }
 0x253   : > { %v1685_v39 = vpop.xlane.xlu1 %1684  ;;  %v2031_v21 = vsel %vm1788_vm6, %v2030_v55, %v2026_v58 }
 0x254   : > { %v2064_v54 = vrot.slane %v1685_v39, %v4635_v7  ;;  %v2001_v7 = vrot.slane %v5037_v46, %v4665_v49  ;;  %v2040_v46 = vrot.slane %v1670_v50, %v4665_v49  ;;  %v407_v17 = vadd.f32 %v406_v31, %v405_v34 }
 0x255   : > { %v1700_v1 = vpop.xlane.xlu0 %1699 }
 0x256   : > { %v2065_v36 = vsel %vm1781_vm5, %v2064_v54, %v2060_v27  ;;  %v2002_v23 = vsel %vm1802_vm8, %v2001_v7, %v1997_v5  ;;  %v2089_v28 = vrot.slane %v1700_v1, %v4686_v35  ;;  %v408_v63 = vrot.slane %v407_v17, 2  ;;  %v2772_v27 = vld [vmem:[#allocation5] sm:$0xff] }
 0x257   : > { %v1667_v60 = vpop.xlane.xlu1 %1666  ;;  %v2007_v3 = vsel %vm1809_vm9, %v2006_v43, %v2002_v23 }
 0x258   : > { %v2035_v51 = vrot.slane %v1667_v60, %v4654_v6  ;;  %v2012_v32 = vsel %vm1816_vm10, %v2011_v53, %v2007_v3  ;;  %v409_v14 = vadd.f32 %v408_v63, %v407_v17 }
 0x259   : > { %v2100_v11 = vsel %vm2099_vm15, %v2012_v32, %v2098_v29 }
 0x25a   : > { %v2036_v20 = vsel %vm1795_vm7, %v2035_v51, %v2031_v21  ;;  %v410_v5 = vrot.slane %v409_v14, 1 }
 0x25b   : > { %v1691_v37 = vpop.xlane.xlu1 %1690  ;;  %v2041_v22 = vsel %vm1802_vm8, %v2040_v46, %v2036_v20 }
 0x25c   : > { %v2074_v30 = vrot.slane %v1691_v37, %v4654_v6  ;;  %v2070_v6 = vsel %vm1788_vm6, %v2069_v12, %v2065_v36  ;;  %v411_v15 = vadd.f32 %v410_v5, %v409_v14 }
 0x25e   : > { %v2075_v40 = vsel %vm1795_vm7, %v2074_v30, %v2070_v6 }
 0x25f   : > { %v1673_v13 = vpop.xlane.xlu1 %1672  ;;  %v2080_v33 = vsel %vm1802_vm8, %v2079_v38, %v2075_v40 }
 0x260   : > { %v2045_v61 = vrot.slane %v1673_v13, %v4675_v59 }
 0x262   : > { %v2046_v50 = vsel %vm1809_vm9, %v2045_v61, %v2041_v22 }
 0x263   : > { %v1697_v39 = vpop.xlane.xlu1 %1696  ;;  %v2051_v62 = vsel %vm1816_vm10, %v2050_v52, %v2046_v50 }
 0x264   : > { %v2084_v44 = vrot.slane %v1697_v39, %v4675_v59  ;;  %v2102_v49 = vsel %vm2101_vm1, %v2051_v62, %v2100_v11 }
 0x266   : > { %v2085_v8 = vsel %vm1809_vm9, %v2084_v44, %v2080_v33 }
 0x267   : > { %v2090_v4 = vsel %vm1816_vm10, %v2089_v28, %v2085_v8  ;;  %v2751_v41 = vpop.xlane.xlu1 %2750 }
 0x268   : > { %v2104_v2 = vsel %vm2103_vm2, %v2090_v4, %v2102_v49  ;;  %v2752_v35 = vmul.f32 2.0, %v2751_v41 }
 0x269   : > { %v2106_v59 = vsel %vm412_vm0, %v2104_v2, 0.0 }
 0x26a   : > { %2107 = vadd.xlane.f32.xlu0 %v2106_v59 }
 0x2f7   : > { %v2108_v56 = vpop.xlane.xlu0 %2107 }
 0x2f8   : > { %v2753_v60 = vsub.f32 %v2108_v56, %v2752_v35 }
 0x2fa   : > { %v2754_v57 = vadd.f32 64.0, %v2753_v60 }
 0x2fc   : > { %v2755_v25 = vmax.f32 %v2754_v57, 0.0 }
 0x2fe   : > { %3636 = vrsqrt.f32 %v2755_v25  ;;  %vm2758_vm0 = vcmp.eq.f32.partialorder %v2755_v25, inf  ;;  %v2761_v58 = vand.u32 2147483648, %v2755_v25  ;;  %vm2760_vm4 = vcmp.eq.f32.partialorder %v2755_v25, 0.0 }
 0x308   : > { %v3637_v16 = vpop.eup %3636 }
 0x309   : > { %v2757_v47 = vmul.f32 %v3637_v16, %v2755_v25 }
 0x30b   : > { %v2759_v54 = vsel %vm2758_vm0, %v2755_v25, %v2757_v47 }
 0x30c   : > { %v2762_v51 = vsel %vm2760_vm4, %v2761_v58, %v2759_v54 }
 0x30d   : > { %v2763_v10 = vsel %vm393_vm3, %v2762_v51, 0.0 }
 0x30e   : > { %v2764_v45 = vrot.slane %v2763_v10, 4 }
 0x310   : > { %v2765_v55 = vadd.f32 %v2764_v45, %v2763_v10 }
 0x312   : > { %v2766_v37 = vrot.slane %v2765_v55, 2 }
 0x314   : > { %v2767_v26 = vadd.f32 %v2766_v37, %v2765_v55 }
 0x316   : > { %v2768_v43 = vrot.slane %v2767_v26, 1 }
 0x318   : > { %v2769_v42 = vadd.f32 %v2768_v43, %v2767_v26 }
 0x31a   : > { %v2770_v7 = vmul.f32 0.001, %v2769_v42 }
 0x31c   : > { %v2771_v21 = vsub.f32 %v2770_v7, %v411_v15 }
 0x31e   : > { %v2773_v9 = vadd.f32 %v2772_v27, %v2771_v21 }
 0x320   : > { %2774 = vst [vmem:[#allocation5] sm:$0xff] %v2773_v9 }
 0x321   : > { %3679 = shalt.err (!%p3676_p2)
}
 0x322   : > { %s3680_s19 = scalar_lea.hbm %s5164_s3, 128 }
 0x323   : > { %p3681_p3 = scmp.ne.s32.totalorder %s5164_s3, %s3680_s19  ;;  %p3686_p5 = scmp.lt.u32.totalorder %s3680_s19, %s5164_s3 }
 0x325   : > { %p3682_p1 = pnand %p3681_p3, %p5117_p8 }
 0x327   : > { %p3683_p4 = pneg %p3682_p1 }
 0x329   : > { %p3688_p12 = pnand %p3686_p5, %p3683_p4 }
 0x32b   : > { %3691 = shalt.err (!%p3688_p12)
}
 0x32c   : > { %3577 = dma.vmem_to_hbm [thread:$0]  (%p5117_p8), %s2785_s27, 128, %s5164_s3, [#allocation4]  }
 0x32d   : > { %3721 = dma.done.wait (%p5117_p8), [#allocation4], 128  }
 0x32e   : > { %3723 = vsyncadd (%p5117_p8), [#allocation4], 4294967168 }
 0x32f PF: > { %s17_s17 = sadd.s32 1, %s3746_s17   ;;  %s5169_s12 = smov %s3730_s13 }
 0x330   : > { %p14_p6 = scmp.ge.s32.totalorder %s17_s17, 4   ;;  %s5170_s13 = smov %s3734_s14 }
 0x331   : > { %s5171_s14 = smov %s3825_s25  ;;  %s5172_s15 = smov %s3742_s16 }
 0x332   : > { %s5173_s16 = smov %s5175_s18  ;;  %16 = sbr.rel (!%p14_p6) target bundleno = 5 (0x5), region = 80 }
 0x339   :  { %2797 = vsyncpa [#allocation3], 1 }
 0x33a   :  { %2799 = vsyncpa [#allocation3 + $0x1], 1 }
 0x33b   :  { %2800 = vsyncpa [#allocation4], 1 }
 0x33c   :  { %2802 = vsyncpa [#allocation4 + $0x1], 1 }

</bundles_post_ra>
